<compile_context>
chip_gen: v7x
topology: tpu7x:2x2x1
jax: 0.10.0
libtpu: 0.0.40
codegen_flags: <defaults>
</compile_context>

<pallas_src>
import functools

import jax
import jax.numpy as jnp
from jax.experimental import pallas as pl
from jax.experimental.pallas import tpu as pltpu


# ----------------------------------------------------------------------------
# In-kernel building block: CSI-conditioned two-layer pointwise MLP on a
# channels-on-sublane / tokens-on-lane slab.
#   out[Cout, S] = W2[Cout,Hd] @ relu(W1[Hd,Cin] @ xc[Cin,S] + b1) + b2
# ----------------------------------------------------------------------------

def _mlp(xc_ref, w1_ref, b1_ref, w2_ref, b2_ref):
    h = jnp.dot(w1_ref[...], xc_ref[...],
                preferred_element_type=jnp.float32) + b1_ref[...]
    h = jnp.maximum(h, 0.0)
    return jnp.dot(w2_ref[...], h,
                   preferred_element_type=jnp.float32) + b2_ref[...]


# ----------------------------------------------------------------------------
# Single fused kernel: far branch (esti_f -> decoder_f) and near SIC branch
# (esti_n -> aux_decoder_f -> power-norm + cancellation -> decoder_n).
# ----------------------------------------------------------------------------

def _rx_kernel(detect_symbol_f, *refs):
    it = iter(refs)
    y_f_ref = next(it)
    csi_f_ref = next(it)
    y_n_ref = next(it)
    csi_n_ref = next(it)
    rho_n_ref = next(it)          # SMEM [B]
    rho_f_ref = next(it)          # SMEM [B]

    def take_mlp():
        return next(it), next(it), next(it), next(it)   # w1, b1, w2, b2

    ef = take_mlp() if detect_symbol_f else None   # symbol_f_esti_f
    df = take_mlp()                                # decoder_f
    en = take_mlp()                                # symbol_f_esti_n
    ax = take_mlp()                                # aux_decoder_f
    dn = take_mlp()                                # decoder_n

    xff_ref = next(it) if detect_symbol_f else None
    sf_ref = next(it)
    xfn_ref = next(it)
    aux_ref = next(it)
    res_ref = next(it)
    sn_ref = next(it)
    xc_ref = next(it)             # VMEM scratch [Cx + Ccsi, S]

    bb = y_f_ref.shape[0]         # samples in this block (static)
    c_x = y_f_ref.shape[1]        # x-channel count (static)
    base = pl.program_id(0) * bb  # global sample offset for SMEM rho lookup

    # Tiny static per-sample loop (bb is small; for very large B raise
    # num_blocks in the wrapper instead of growing this unroll).
    for lb in range(bb):
        # -------------------- far-user branch --------------------
        xc_ref[c_x:, :] = csi_f_ref[lb]            # csi rows written once
        xc_ref[:c_x, :] = y_f_ref[lb]
        if detect_symbol_f:
            xff = _mlp(xc_ref, *ef)                # x_f_hat_f
            xff_ref[lb] = xff.astype(xff_ref.dtype)
            xc_ref[:c_x, :] = xff                  # decoder_f input
        sf = _mlp(xc_ref, *df)                     # s_f_hat
        sf_ref[lb] = sf.astype(sf_ref.dtype)

        # -------------------- near-user SIC branch --------------------
        y_n = y_n_ref[lb]
        xc_ref[c_x:, :] = csi_n_ref[lb]            # csi rows written once
        xc_ref[:c_x, :] = y_n
        xfn = _mlp(xc_ref, *en)                    # x_f_hat_n
        xfn_ref[lb] = xfn.astype(xfn_ref.dtype)

        xc_ref[:c_x, :] = xfn
        aux = _mlp(xc_ref, *ax)                    # aux_s_f_n
        aux_ref[lb] = aux.astype(aux_ref.dtype)

        # SIC residual: per-sample power_norm over the C*H*W flatten, then
        # cancellation with the per-sample rho scalars (read from SMEM).
        # TODO(synk): power_norm() is not defined in the provided snippet;
        # this uses the standard 'real' unit-average-power normalization
        # x / sqrt(mean(x^2)) over the full per-sample flatten (eps guards
        # all-zero inputs).
        mean_sq = jnp.mean(xfn * xfn, keepdims=True)            # [1, 1]
        xfn_norm = xfn * jax.lax.rsqrt(mean_sq + 1e-12)
        rho_f_b = jnp.full((1, 1), rho_f_ref[base + lb], jnp.float32)
        rho_n_b = jnp.full((1, 1), rho_n_ref[base + lb], jnp.float32)
        res = (y_n - jnp.sqrt(rho_f_b) * xfn_norm) * jax.lax.rsqrt(rho_n_b)
        res_ref[lb] = res.astype(res_ref.dtype)

        xc_ref[:c_x, :] = res
        sn = _mlp(xc_ref, *dn)                     # s_n_hat
        sn_ref[lb] = sn.astype(sn_ref.dtype)


# ----------------------------------------------------------------------------
# Wrapper: one pallas_call for the whole receiver forward.
# ----------------------------------------------------------------------------

def rx_scheme_fused(params, y_n, y_f, csi_n, csi_f, rho_n, rho_f, *,
                    detect_symbol_f=True, num_blocks=1):
    """Returns (s_n_hat, s_f_hat, aux_s_f_n, residual, x_f_hat_f, x_f_hat_n),
    each in NCHW (x_f_hat_f is None when detect_symbol_f is False)."""
    B, C, H, W = y_n.shape
    S = H * W
    Ccsi = csi_n.shape[1]
    Csrc = params["decoder_n"]["w2"].shape[0]
    assert B % num_blocks == 0
    bb = B // num_blocks          # samples per grid step

    def feat(c):
        # One batch-block per grid step, channels on sublanes, H*W on lanes.
        return pl.BlockSpec((bb, c, S), lambda i: (i, 0, 0))

    def wspecs(p):
        # Tiny resident weight blocks (full arrays, same block every step).
        return [pl.BlockSpec(p[k].shape, lambda i: (0, 0))
                for k in ("w1", "b1", "w2", "b2")]

    def wargs(p):
        return [p[k] for k in ("w1", "b1", "w2", "b2")]

    smem = pl.BlockSpec(memory_space=pltpu.MemorySpace.SMEM)

    in_specs = [feat(C), feat(Ccsi), feat(C), feat(Ccsi), smem, smem]
    args = [y_f.reshape(B, C, S), csi_f.reshape(B, Ccsi, S),
            y_n.reshape(B, C, S), csi_n.reshape(B, Ccsi, S),
            rho_n.reshape(B), rho_f.reshape(B)]

    mlp_names = (["symbol_f_esti_f"] if detect_symbol_f else []) + \
                ["decoder_f", "symbol_f_esti_n", "aux_decoder_f", "decoder_n"]
    for name in mlp_names:
        in_specs += wspecs(params[name])
        args += wargs(params[name])

    out_shapes, out_specs = [], []
    if detect_symbol_f:
        out_shapes.append(jax.ShapeDtypeStruct((B, C, S), y_f.dtype))   # x_f_hat_f
        out_specs.append(feat(C))
    out_shapes += [jax.ShapeDtypeStruct((B, Csrc, S), y_f.dtype),       # s_f_hat
                   jax.ShapeDtypeStruct((B, C, S), y_n.dtype),          # x_f_hat_n
                   jax.ShapeDtypeStruct((B, Csrc, S), y_n.dtype),       # aux_s_f_n
                   jax.ShapeDtypeStruct((B, C, S), y_n.dtype),          # residual
                   jax.ShapeDtypeStruct((B, Csrc, S), y_n.dtype)]       # s_n_hat
    out_specs += [feat(Csrc), feat(C), feat(Csrc), feat(C), feat(Csrc)]

    outs = pl.pallas_call(
        functools.partial(_rx_kernel, detect_symbol_f),
        out_shape=tuple(out_shapes),
        grid=(num_blocks,),
        in_specs=in_specs,
        out_specs=tuple(out_specs),
        scratch_shapes=[pltpu.VMEM((C + Ccsi, S), jnp.float32)],
        compiler_params=pltpu.CompilerParams(
            dimension_semantics=("parallel",)),
    )(*args)

    if detect_symbol_f:
        xff, sf, xfn, aux, res, sn = outs
        x_f_hat_f = xff.reshape(B, C, H, W)
    else:
        sf, xfn, aux, res, sn = outs
        x_f_hat_f = None

    return (sn.reshape(B, Csrc, H, W),
            sf.reshape(B, Csrc, H, W),
            aux.reshape(B, Csrc, H, W),
            res.reshape(B, C, H, W),
            x_f_hat_f,
            xfn.reshape(B, C, H, W))


# ----------------------------------------------------------------------------
# Rx_scheme forward: config['scheme_rx'] == 'sic_sccoding'
# ----------------------------------------------------------------------------

CONFIG = {
    "scheme_rx": "sic_sccoding",
    "scheme_tx": "exp_pow_learning_sc",   # not 'fusion', not 'inexp_pow_learning_sc'
    "detect_symbol_f": True,
    "detect_symbol_n": True,
    "use_side_info": False,
}


def rx_scheme_forward(params, y_n, y_f, csi_n, csi_f, rho_n, rho_f,
                      config=CONFIG, num_blocks=1):
    assert config["scheme_rx"] == "sic_sccoding"
    assert config["scheme_tx"] != "fusion"
    assert config["scheme_tx"] != "inexp_pow_learning_sc"

    s_n_hat, s_f_hat, aux_s_f_n, residual, x_f_hat_f, x_f_hat_n = rx_scheme_fused(
        params, y_n, y_f, csi_n, csi_f, rho_n, rho_f,
        detect_symbol_f=config["detect_symbol_f"], num_blocks=num_blocks)

    x_n_hat_n = residual if config["detect_symbol_n"] else None
    return s_n_hat, s_f_hat, aux_s_f_n, x_n_hat_n, x_f_hat_f, x_f_hat_n


# ----------------------------------------------------------------------------
# Parameters (synthetic CSI-conditioned 1x1-conv MLPs; w1 stored pre-fused
# over the [x; csi] input channels, weights pre-transposed to [out, in]).
# ----------------------------------------------------------------------------

def init_mlp_params(key, cin, hidden, cout, scale=1.0):
    k1, k2 = jax.random.split(key, 2)
    w1 = (scale / jnp.sqrt(cin)) * jax.random.normal(k1, (hidden, cin), jnp.float32)
    w2 = (scale / jnp.sqrt(hidden)) * jax.random.normal(k2, (cout, hidden), jnp.float32)
    b1 = jnp.zeros((hidden, 1), jnp.float32)
    b2 = jnp.zeros((cout, 1), jnp.float32)
    return {"w1": w1, "b1": b1, "w2": w2, "b2": b2}


# ----------------------------------------------------------------------------
# Pure-JAX reference (for correctness check).
# ----------------------------------------------------------------------------

def _ref_mlp(x, csi, p):
    xc = jnp.concatenate([x, csi], axis=1)                     # [B, Cin, S]
    h = jnp.einsum("hc,bcs->bhs", p["w1"], xc) + p["b1"][None]
    h = jnp.maximum(h, 0.0)
    return jnp.einsum("oh,bhs->bos", p["w2"], h) + p["b2"][None]


def reference_forward(params, y_n, y_f, csi_n, csi_f, rho_n, rho_f, config):
    B, C, H, W = y_n.shape
    S = H * W
    yf = y_f.reshape(B, C, S); cf = csi_f.reshape(B, -1, S)
    yn = y_n.reshape(B, C, S); cn = csi_n.reshape(B, -1, S)
    if config["detect_symbol_f"]:
        xff = _ref_mlp(yf, cf, params["symbol_f_esti_f"])
        sf = _ref_mlp(xff, cf, params["decoder_f"])
    else:
        xff = None
        sf = _ref_mlp(yf, cf, params["decoder_f"])
    xfn = _ref_mlp(yn, cn, params["symbol_f_esti_n"])
    aux = _ref_mlp(xfn, cn, params["aux_decoder_f"])
    mean_sq = jnp.mean(xfn * xfn, axis=(1, 2), keepdims=True)
    xfn_norm = xfn * jax.lax.rsqrt(mean_sq + 1e-12)
    res = (yn - jnp.sqrt(rho_f).reshape(B, 1, 1) * xfn_norm) \
          * jax.lax.rsqrt(rho_n.reshape(B, 1, 1))
    sn = _ref_mlp(res, cn, params["decoder_n"])
    shape_c = lambda a: None if a is None else a.reshape(B, -1, H, W)
    x_n_hat_n = res if config["detect_symbol_n"] else None
    return tuple(shape_c(a) for a in (sn, sf, aux, x_n_hat_n, xff, xfn))


# ----------------------------------------------------------------------------
# Main
# ----------------------------------------------------------------------------

if __name__ == "__main__":
    B, C, C_CSI, H, W = 2, 4, 4, 16, 16
    HIDDEN, C_SRC = 32, 4

    root = jax.random.PRNGKey(0)
    keys = jax.random.split(root, 16)

    params = {
        "symbol_f_esti_f": init_mlp_params(keys[0], C + C_CSI, HIDDEN, C),
        "symbol_f_esti_n": init_mlp_params(keys[1], C + C_CSI, HIDDEN, C),
        "decoder_f":       init_mlp_params(keys[2], C + C_CSI, HIDDEN, C_SRC),
        "decoder_n":       init_mlp_params(keys[3], C + C_CSI, HIDDEN, C_SRC),
        "aux_decoder_f":   init_mlp_params(keys[4], C + C_CSI, HIDDEN, C_SRC),
    }

    y_n   = jax.random.normal(keys[8],  (B, C, H, W), jnp.float32)
    y_f   = jax.random.normal(keys[9],  (B, C, H, W), jnp.float32)
    csi_n = jax.random.normal(keys[10], (B, C_CSI, H, W), jnp.float32)
    csi_f = jax.random.normal(keys[11], (B, C_CSI, H, W), jnp.float32)
    rho_n = jnp.full((B, 1), 0.6, jnp.float32)
    rho_f = jnp.full((B, 1), 0.4, jnp.float32)

    # num_blocks=1: whole batch in one grid step (best for v5e/v6e's single TC).
    # On v7x set num_blocks=2 to feed both TensorCores.
    fwd = jax.jit(functools.partial(rx_scheme_forward, config=CONFIG, num_blocks=1))
    outs = fwd(params, y_n, y_f, csi_n, csi_f, rho_n, rho_f)
    for o in outs:
        if o is not None:
            jax.block_until_ready(o)

    s_n_hat, s_f_hat, aux_s_f_n, x_n_hat_n, x_f_hat_f, x_f_hat_n = outs
    assert s_n_hat.shape == (B, C_SRC, H, W)
    assert s_f_hat.shape == (B, C_SRC, H, W)
    assert aux_s_f_n.shape == (B, C_SRC, H, W)
    assert x_n_hat_n.shape == (B, C, H, W)
    assert x_f_hat_f.shape == (B, C, H, W)
    assert x_f_hat_n.shape == (B, C, H, W)
    assert all(bool(jnp.all(jnp.isfinite(o))) for o in outs if o is not None)

    # Correctness vs. pure-JAX reference.
    ref = reference_forward(params, y_n, y_f, csi_n, csi_f, rho_n, rho_f, CONFIG)
    for got, want in zip(outs, ref):
        if want is None:
            assert got is None
        else:
            assert jnp.allclose(got, want, rtol=1e-4, atol=1e-4)

    print("KERNEL_OK")
</pallas_src>

<mosaic_0001>
module attributes {stable_mosaic.version = 11 : i64} {
  func.func @_rx_kernel(%arg0: i32, %arg1: memref<2x4x256xf32, #tpu.memory_space<vmem>>, %arg2: memref<2x4x256xf32, #tpu.memory_space<vmem>>, %arg3: memref<2x4x256xf32, #tpu.memory_space<vmem>>, %arg4: memref<2x4x256xf32, #tpu.memory_space<vmem>>, %arg5: memref<2xf32, #tpu.memory_space<smem>>, %arg6: memref<2xf32, #tpu.memory_space<smem>>, %arg7: memref<32x8xf32, #tpu.memory_space<vmem>>, %arg8: memref<32x1xf32, #tpu.memory_space<vmem>>, %arg9: memref<4x32xf32, #tpu.memory_space<vmem>>, %arg10: memref<4x1xf32, #tpu.memory_space<vmem>>, %arg11: memref<32x8xf32, #tpu.memory_space<vmem>>, %arg12: memref<32x1xf32, #tpu.memory_space<vmem>>, %arg13: memref<4x32xf32, #tpu.memory_space<vmem>>, %arg14: memref<4x1xf32, #tpu.memory_space<vmem>>, %arg15: memref<32x8xf32, #tpu.memory_space<vmem>>, %arg16: memref<32x1xf32, #tpu.memory_space<vmem>>, %arg17: memref<4x32xf32, #tpu.memory_space<vmem>>, %arg18: memref<4x1xf32, #tpu.memory_space<vmem>>, %arg19: memref<32x8xf32, #tpu.memory_space<vmem>>, %arg20: memref<32x1xf32, #tpu.memory_space<vmem>>, %arg21: memref<4x32xf32, #tpu.memory_space<vmem>>, %arg22: memref<4x1xf32, #tpu.memory_space<vmem>>, %arg23: memref<32x8xf32, #tpu.memory_space<vmem>>, %arg24: memref<32x1xf32, #tpu.memory_space<vmem>>, %arg25: memref<4x32xf32, #tpu.memory_space<vmem>>, %arg26: memref<4x1xf32, #tpu.memory_space<vmem>>, %arg27: memref<2x4x256xf32, #tpu.memory_space<vmem>>, %arg28: memref<2x4x256xf32, #tpu.memory_space<vmem>>, %arg29: memref<2x4x256xf32, #tpu.memory_space<vmem>>, %arg30: memref<2x4x256xf32, #tpu.memory_space<vmem>>, %arg31: memref<2x4x256xf32, #tpu.memory_space<vmem>>, %arg32: memref<2x4x256xf32, #tpu.memory_space<vmem>>, %arg33: memref<8x256xf32, #tpu.memory_space<vmem>>) attributes {dimension_semantics = [#tpu.dimension_semantics<parallel>], iteration_bounds = array<i64: 1>, scalar_prefetch = 0 : i64, scratch_operands = 1 : i64, tpu.core_type = #tpu.core_type<tc>, window_params = [{transform_indices = @transform_0, window_bounds = array<i64: 2, 4, 256>}, {transform_indices = @transform_1, window_bounds = array<i64: 2, 4, 256>}, {transform_indices = @transform_2, window_bounds = array<i64: 2, 4, 256>}, {transform_indices = @transform_3, window_bounds = array<i64: 2, 4, 256>}, {transform_indices = @transform_4, window_bounds = array<i64: 2>}, {transform_indices = @transform_5, window_bounds = array<i64: 2>}, {pipeline_mode = #tpu.pipeline_mode<synchronous>, transform_indices = @transform_6, window_bounds = array<i64: 32, 8>}, {pipeline_mode = #tpu.pipeline_mode<synchronous>, transform_indices = @transform_7, window_bounds = array<i64: 32, 1>}, {pipeline_mode = #tpu.pipeline_mode<synchronous>, transform_indices = @transform_8, window_bounds = array<i64: 4, 32>}, {pipeline_mode = #tpu.pipeline_mode<synchronous>, transform_indices = @transform_9, window_bounds = array<i64: 4, 1>}, {pipeline_mode = #tpu.pipeline_mode<synchronous>, transform_indices = @transform_10, window_bounds = array<i64: 32, 8>}, {pipeline_mode = #tpu.pipeline_mode<synchronous>, transform_indices = @transform_11, window_bounds = array<i64: 32, 1>}, {pipeline_mode = #tpu.pipeline_mode<synchronous>, transform_indices = @transform_12, window_bounds = array<i64: 4, 32>}, {pipeline_mode = #tpu.pipeline_mode<synchronous>, transform_indices = @transform_13, window_bounds = array<i64: 4, 1>}, {pipeline_mode = #tpu.pipeline_mode<synchronous>, transform_indices = @transform_14, window_bounds = array<i64: 32, 8>}, {pipeline_mode = #tpu.pipeline_mode<synchronous>, transform_indices = @transform_15, window_bounds = array<i64: 32, 1>}, {pipeline_mode = #tpu.pipeline_mode<synchronous>, transform_indices = @transform_16, window_bounds = array<i64: 4, 32>}, {pipeline_mode = #tpu.pipeline_mode<synchronous>, transform_indices = @transform_17, window_bounds = array<i64: 4, 1>}, {pipeline_mode = #tpu.pipeline_mode<synchronous>, transform_indices = @transform_18, window_bounds = array<i64: 32, 8>}, {pipeline_mode = #tpu.pipeline_mode<synchronous>, transform_indices = @transform_19, window_bounds = array<i64: 32, 1>}, {pipeline_mode = #tpu.pipeline_mode<synchronous>, transform_indices = @transform_20, window_bounds = array<i64: 4, 32>}, {pipeline_mode = #tpu.pipeline_mode<synchronous>, transform_indices = @transform_21, window_bounds = array<i64: 4, 1>}, {pipeline_mode = #tpu.pipeline_mode<synchronous>, transform_indices = @transform_22, window_bounds = array<i64: 32, 8>}, {pipeline_mode = #tpu.pipeline_mode<synchronous>, transform_indices = @transform_23, window_bounds = array<i64: 32, 1>}, {pipeline_mode = #tpu.pipeline_mode<synchronous>, transform_indices = @transform_24, window_bounds = array<i64: 4, 32>}, {pipeline_mode = #tpu.pipeline_mode<synchronous>, transform_indices = @transform_25, window_bounds = array<i64: 4, 1>}, {transform_indices = @transform_26, window_bounds = array<i64: 2, 4, 256>}, {transform_indices = @transform_27, window_bounds = array<i64: 2, 4, 256>}, {transform_indices = @transform_28, window_bounds = array<i64: 2, 4, 256>}, {transform_indices = @transform_29, window_bounds = array<i64: 2, 4, 256>}, {transform_indices = @transform_30, window_bounds = array<i64: 2, 4, 256>}, {transform_indices = @transform_31, window_bounds = array<i64: 2, 4, 256>}]} {
    %c2_i32 = arith.constant 2 : i32
    %0 = arith.muli %arg0, %c2_i32 : i32
    %c0 = arith.constant 0 : index
    %c0_0 = arith.constant 0 : index
    %c0_1 = arith.constant 0 : index
    %1 = vector.load %arg2[%c0, %c0_0, %c0_1] : memref<2x4x256xf32, #tpu.memory_space<vmem>>, vector<1x4x256xf32>
    %2 = vector.shape_cast %1 : vector<1x4x256xf32> to vector<4x256xf32>
    %c4 = arith.constant 4 : index
    %c0_2 = arith.constant 0 : index
    %3 = vector.load %arg33[%c4, %c0_2] : memref<8x256xf32, #tpu.memory_space<vmem>>, vector<4x256xf32>
    tpu.vector_store %arg33[%c4, %c0_2], %2 {strides = array<i32>} : memref<8x256xf32, #tpu.memory_space<vmem>>, vector<4x256xf32>,
    %c0_3 = arith.constant 0 : index
    %c0_4 = arith.constant 0 : index
    %c0_5 = arith.constant 0 : index
    %4 = vector.load %arg1[%c0_3, %c0_4, %c0_5] : memref<2x4x256xf32, #tpu.memory_space<vmem>>, vector<1x4x256xf32>
    %5 = vector.shape_cast %4 : vector<1x4x256xf32> to vector<4x256xf32>
    %c0_6 = arith.constant 0 : index
    %c0_7 = arith.constant 0 : index
    %6 = vector.load %arg33[%c0_6, %c0_7] : memref<8x256xf32, #tpu.memory_space<vmem>>, vector<4x256xf32>
    tpu.vector_store %arg33[%c0_6, %c0_7], %5 {strides = array<i32>} : memref<8x256xf32, #tpu.memory_space<vmem>>, vector<4x256xf32>,
    %c0_8 = arith.constant 0 : index
    %c0_9 = arith.constant 0 : index
    %7 = vector.load %arg7[%c0_8, %c0_9] : memref<32x8xf32, #tpu.memory_space<vmem>>, vector<32x8xf32>
    %c0_10 = arith.constant 0 : index
    %c0_11 = arith.constant 0 : index
    %8 = vector.load %arg33[%c0_10, %c0_11] : memref<8x256xf32, #tpu.memory_space<vmem>>, vector<8x256xf32>
    %cst = arith.constant dense<0.000000e+00> : vector<32x256xf32>
    %9 = tpu.matmul %7, %8, %cst {dimension_numbers = #tpu.dot_dimension_numbers<[1], [0], [0], [1], [0, 0, 1, 1], [], []>} : vector<32x8xf32>, vector<8x256xf32>, vector<32x256xf32> -> vector<32x256xf32>
    %c0_12 = arith.constant 0 : index
    %c0_13 = arith.constant 0 : index
    %10 = vector.load %arg8[%c0_12, %c0_13] : memref<32x1xf32, #tpu.memory_space<vmem>>, vector<32x1xf32>
    %11 = vector.broadcast %10 : vector<32x1xf32> to vector<32x256xf32>
    %12 = arith.addf %9, %11 : vector<32x256xf32>
    %cst_14 = arith.constant 0.000000e+00 : f32
    %13 = vector.broadcast %cst_14 : f32 to vector<32x256xf32>
    %14 = arith.maximumf %12, %13 : vector<32x256xf32>
    %c0_15 = arith.constant 0 : index
    %c0_16 = arith.constant 0 : index
    %15 = vector.load %arg9[%c0_15, %c0_16] : memref<4x32xf32, #tpu.memory_space<vmem>>, vector<4x32xf32>
    %cst_17 = arith.constant dense<0.000000e+00> : vector<4x256xf32>
    %16 = tpu.matmul %15, %14, %cst_17 {dimension_numbers = #tpu.dot_dimension_numbers<[1], [0], [0], [1], [0, 0, 1, 1], [], []>} : vector<4x32xf32>, vector<32x256xf32>, vector<4x256xf32> -> vector<4x256xf32>
    %c0_18 = arith.constant 0 : index
    %c0_19 = arith.constant 0 : index
    %17 = vector.load %arg10[%c0_18, %c0_19] : memref<4x1xf32, #tpu.memory_space<vmem>>, vector<4x1xf32>
    %18 = vector.broadcast %17 : vector<4x1xf32> to vector<4x256xf32>
    %19 = arith.addf %16, %18 : vector<4x256xf32>
    %c0_20 = arith.constant 0 : index
    %c0_21 = arith.constant 0 : index
    %c0_22 = arith.constant 0 : index
    %20 = vector.load %arg27[%c0_20, %c0_21, %c0_22] : memref<2x4x256xf32, #tpu.memory_space<vmem>>, vector<1x4x256xf32>
    %21 = vector.shape_cast %20 : vector<1x4x256xf32> to vector<4x256xf32>
    %22 = vector.shape_cast %19 : vector<4x256xf32> to vector<1x4x256xf32>
    tpu.vector_store %arg27[%c0_20, %c0_21, %c0_22], %22 {strides = array<i32>} : memref<2x4x256xf32, #tpu.memory_space<vmem>>, vector<1x4x256xf32>,
    %c0_23 = arith.constant 0 : index
    %c0_24 = arith.constant 0 : index
    %23 = vector.load %arg33[%c0_23, %c0_24] : memref<8x256xf32, #tpu.memory_space<vmem>>, vector<4x256xf32>
    tpu.vector_store %arg33[%c0_23, %c0_24], %19 {strides = array<i32>} : memref<8x256xf32, #tpu.memory_space<vmem>>, vector<4x256xf32>,
    %c0_25 = arith.constant 0 : index
    %c0_26 = arith.constant 0 : index
    %24 = vector.load %arg11[%c0_25, %c0_26] : memref<32x8xf32, #tpu.memory_space<vmem>>, vector<32x8xf32>
    %c0_27 = arith.constant 0 : index
    %c0_28 = arith.constant 0 : index
    %25 = vector.load %arg33[%c0_27, %c0_28] : memref<8x256xf32, #tpu.memory_space<vmem>>, vector<8x256xf32>
    %cst_29 = arith.constant dense<0.000000e+00> : vector<32x256xf32>
    %26 = tpu.matmul %24, %25, %cst_29 {dimension_numbers = #tpu.dot_dimension_numbers<[1], [0], [0], [1], [0, 0, 1, 1], [], []>} : vector<32x8xf32>, vector<8x256xf32>, vector<32x256xf32> -> vector<32x256xf32>
    %c0_30 = arith.constant 0 : index
    %c0_31 = arith.constant 0 : index
    %27 = vector.load %arg12[%c0_30, %c0_31] : memref<32x1xf32, #tpu.memory_space<vmem>>, vector<32x1xf32>
    %28 = vector.broadcast %27 : vector<32x1xf32> to vector<32x256xf32>
    %29 = arith.addf %26, %28 : vector<32x256xf32>
    %cst_32 = arith.constant 0.000000e+00 : f32
    %30 = vector.broadcast %cst_32 : f32 to vector<32x256xf32>
    %31 = arith.maximumf %29, %30 : vector<32x256xf32>
    %c0_33 = arith.constant 0 : index
    %c0_34 = arith.constant 0 : index
    %32 = vector.load %arg13[%c0_33, %c0_34] : memref<4x32xf32, #tpu.memory_space<vmem>>, vector<4x32xf32>
    %cst_35 = arith.constant dense<0.000000e+00> : vector<4x256xf32>
    %33 = tpu.matmul %32, %31, %cst_35 {dimension_numbers = #tpu.dot_dimension_numbers<[1], [0], [0], [1], [0, 0, 1, 1], [], []>} : vector<4x32xf32>, vector<32x256xf32>, vector<4x256xf32> -> vector<4x256xf32>
    %c0_36 = arith.constant 0 : index
    %c0_37 = arith.constant 0 : index
    %34 = vector.load %arg14[%c0_36, %c0_37] : memref<4x1xf32, #tpu.memory_space<vmem>>, vector<4x1xf32>
    %35 = vector.broadcast %34 : vector<4x1xf32> to vector<4x256xf32>
    %36 = arith.addf %33, %35 : vector<4x256xf32>
    %c0_38 = arith.constant 0 : index
    %c0_39 = arith.constant 0 : index
    %c0_40 = arith.constant 0 : index
    %37 = vector.load %arg28[%c0_38, %c0_39, %c0_40] : memref<2x4x256xf32, #tpu.memory_space<vmem>>, vector<1x4x256xf32>
    %38 = vector.shape_cast %37 : vector<1x4x256xf32> to vector<4x256xf32>
    %39 = vector.shape_cast %36 : vector<4x256xf32> to vector<1x4x256xf32>
    tpu.vector_store %arg28[%c0_38, %c0_39, %c0_40], %39 {strides = array<i32>} : memref<2x4x256xf32, #tpu.memory_space<vmem>>, vector<1x4x256xf32>,
    %c0_41 = arith.constant 0 : index
    %c0_42 = arith.constant 0 : index
    %c0_43 = arith.constant 0 : index
    %40 = vector.load %arg3[%c0_41, %c0_42, %c0_43] : memref<2x4x256xf32, #tpu.memory_space<vmem>>, vector<1x4x256xf32>
    %41 = vector.shape_cast %40 : vector<1x4x256xf32> to vector<4x256xf32>
    %c0_44 = arith.constant 0 : index
    %c0_45 = arith.constant 0 : index
    %c0_46 = arith.constant 0 : index
    %42 = vector.load %arg4[%c0_44, %c0_45, %c0_46] : memref<2x4x256xf32, #tpu.memory_space<vmem>>, vector<1x4x256xf32>
    %43 = vector.shape_cast %42 : vector<1x4x256xf32> to vector<4x256xf32>
    %c4_47 = arith.constant 4 : index
    %c0_48 = arith.constant 0 : index
    %44 = vector.load %arg33[%c4_47, %c0_48] : memref<8x256xf32, #tpu.memory_space<vmem>>, vector<4x256xf32>
    tpu.vector_store %arg33[%c4_47, %c0_48], %43 {strides = array<i32>} : memref<8x256xf32, #tpu.memory_space<vmem>>, vector<4x256xf32>,
    %c0_49 = arith.constant 0 : index
    %c0_50 = arith.constant 0 : index
    %45 = vector.load %arg33[%c0_49, %c0_50] : memref<8x256xf32, #tpu.memory_space<vmem>>, vector<4x256xf32>
    tpu.vector_store %arg33[%c0_49, %c0_50], %41 {strides = array<i32>} : memref<8x256xf32, #tpu.memory_space<vmem>>, vector<4x256xf32>,
    %c0_51 = arith.constant 0 : index
    %c0_52 = arith.constant 0 : index
    %46 = vector.load %arg15[%c0_51, %c0_52] : memref<32x8xf32, #tpu.memory_space<vmem>>, vector<32x8xf32>
    %c0_53 = arith.constant 0 : index
    %c0_54 = arith.constant 0 : index
    %47 = vector.load %arg33[%c0_53, %c0_54] : memref<8x256xf32, #tpu.memory_space<vmem>>, vector<8x256xf32>
    %cst_55 = arith.constant dense<0.000000e+00> : vector<32x256xf32>
    %48 = tpu.matmul %46, %47, %cst_55 {dimension_numbers = #tpu.dot_dimension_numbers<[1], [0], [0], [1], [0, 0, 1, 1], [], []>} : vector<32x8xf32>, vector<8x256xf32>, vector<32x256xf32> -> vector<32x256xf32>
    %c0_56 = arith.constant 0 : index
    %c0_57 = arith.constant 0 : index
    %49 = vector.load %arg16[%c0_56, %c0_57] : memref<32x1xf32, #tpu.memory_space<vmem>>, vector<32x1xf32>
    %50 = vector.broadcast %49 : vector<32x1xf32> to vector<32x256xf32>
    %51 = arith.addf %48, %50 : vector<32x256xf32>
    %cst_58 = arith.constant 0.000000e+00 : f32
    %52 = vector.broadcast %cst_58 : f32 to vector<32x256xf32>
    %53 = arith.maximumf %51, %52 : vector<32x256xf32>
    %c0_59 = arith.constant 0 : index
    %c0_60 = arith.constant 0 : index
    %54 = vector.load %arg17[%c0_59, %c0_60] : memref<4x32xf32, #tpu.memory_space<vmem>>, vector<4x32xf32>
    %cst_61 = arith.constant dense<0.000000e+00> : vector<4x256xf32>
    %55 = tpu.matmul %54, %53, %cst_61 {dimension_numbers = #tpu.dot_dimension_numbers<[1], [0], [0], [1], [0, 0, 1, 1], [], []>} : vector<4x32xf32>, vector<32x256xf32>, vector<4x256xf32> -> vector<4x256xf32>
    %c0_62 = arith.constant 0 : index
    %c0_63 = arith.constant 0 : index
    %56 = vector.load %arg18[%c0_62, %c0_63] : memref<4x1xf32, #tpu.memory_space<vmem>>, vector<4x1xf32>
    %57 = vector.broadcast %56 : vector<4x1xf32> to vector<4x256xf32>
    %58 = arith.addf %55, %57 : vector<4x256xf32>
    %c0_64 = arith.constant 0 : index
    %c0_65 = arith.constant 0 : index
    %c0_66 = arith.constant 0 : index
    %59 = vector.load %arg29[%c0_64, %c0_65, %c0_66] : memref<2x4x256xf32, #tpu.memory_space<vmem>>, vector<1x4x256xf32>
    %60 = vector.shape_cast %59 : vector<1x4x256xf32> to vector<4x256xf32>
    %61 = vector.shape_cast %58 : vector<4x256xf32> to vector<1x4x256xf32>
    tpu.vector_store %arg29[%c0_64, %c0_65, %c0_66], %61 {strides = array<i32>} : memref<2x4x256xf32, #tpu.memory_space<vmem>>, vector<1x4x256xf32>,
    %c0_67 = arith.constant 0 : index
    %c0_68 = arith.constant 0 : index
    %62 = vector.load %arg33[%c0_67, %c0_68] : memref<8x256xf32, #tpu.memory_space<vmem>>, vector<4x256xf32>
    tpu.vector_store %arg33[%c0_67, %c0_68], %58 {strides = array<i32>} : memref<8x256xf32, #tpu.memory_space<vmem>>, vector<4x256xf32>,
    %c0_69 = arith.constant 0 : index
    %c0_70 = arith.constant 0 : index
    %63 = vector.load %arg19[%c0_69, %c0_70] : memref<32x8xf32, #tpu.memory_space<vmem>>, vector<32x8xf32>
    %c0_71 = arith.constant 0 : index
    %c0_72 = arith.constant 0 : index
    %64 = vector.load %arg33[%c0_71, %c0_72] : memref<8x256xf32, #tpu.memory_space<vmem>>, vector<8x256xf32>
    %cst_73 = arith.constant dense<0.000000e+00> : vector<32x256xf32>
    %65 = tpu.matmul %63, %64, %cst_73 {dimension_numbers = #tpu.dot_dimension_numbers<[1], [0], [0], [1], [0, 0, 1, 1], [], []>} : vector<32x8xf32>, vector<8x256xf32>, vector<32x256xf32> -> vector<32x256xf32>
    %c0_74 = arith.constant 0 : index
    %c0_75 = arith.constant 0 : index
    %66 = vector.load %arg20[%c0_74, %c0_75] : memref<32x1xf32, #tpu.memory_space<vmem>>, vector<32x1xf32>
    %67 = vector.broadcast %66 : vector<32x1xf32> to vector<32x256xf32>
    %68 = arith.addf %65, %67 : vector<32x256xf32>
    %cst_76 = arith.constant 0.000000e+00 : f32
    %69 = vector.broadcast %cst_76 : f32 to vector<32x256xf32>
    %70 = arith.maximumf %68, %69 : vector<32x256xf32>
    %c0_77 = arith.constant 0 : index
    %c0_78 = arith.constant 0 : index
    %71 = vector.load %arg21[%c0_77, %c0_78] : memref<4x32xf32, #tpu.memory_space<vmem>>, vector<4x32xf32>
    %cst_79 = arith.constant dense<0.000000e+00> : vector<4x256xf32>
    %72 = tpu.matmul %71, %70, %cst_79 {dimension_numbers = #tpu.dot_dimension_numbers<[1], [0], [0], [1], [0, 0, 1, 1], [], []>} : vector<4x32xf32>, vector<32x256xf32>, vector<4x256xf32> -> vector<4x256xf32>
    %c0_80 = arith.constant 0 : index
    %c0_81 = arith.constant 0 : index
    %73 = vector.load %arg22[%c0_80, %c0_81] : memref<4x1xf32, #tpu.memory_space<vmem>>, vector<4x1xf32>
    %74 = vector.broadcast %73 : vector<4x1xf32> to vector<4x256xf32>
    %75 = arith.addf %72, %74 : vector<4x256xf32>
    %c0_82 = arith.constant 0 : index
    %c0_83 = arith.constant 0 : index
    %c0_84 = arith.constant 0 : index
    %76 = vector.load %arg30[%c0_82, %c0_83, %c0_84] : memref<2x4x256xf32, #tpu.memory_space<vmem>>, vector<1x4x256xf32>
    %77 = vector.shape_cast %76 : vector<1x4x256xf32> to vector<4x256xf32>
    %78 = vector.shape_cast %75 : vector<4x256xf32> to vector<1x4x256xf32>
    tpu.vector_store %arg30[%c0_82, %c0_83, %c0_84], %78 {strides = array<i32>} : memref<2x4x256xf32, #tpu.memory_space<vmem>>, vector<1x4x256xf32>,
    %79 = arith.mulf %58, %58 : vector<4x256xf32>
    %80 = vector.shape_cast %79 : vector<4x256xf32> to vector<1x4x256xf32>
    %cst_85 = arith.constant dense<0.000000e+00> : vector<1xf32>
    %81 = vector.multi_reduction <add>, %80, %cst_85 [1, 2] : vector<1x4x256xf32> to vector<1xf32>
    %82 = vector.shape_cast %81 : vector<1xf32> to vector<1x1x1xf32>
    %83 = vector.extract %82[0, 0, 0] : f32 from vector<1x1x1xf32>
    %84 = vector.broadcast %83 : f32 to vector<1x1xf32>
    %cst_86 = arith.constant 1.024000e+03 : f32
    %85 = vector.broadcast %cst_86 : f32 to vector<1x1xf32>
    %86 = arith.divf %84, %85 : vector<1x1xf32>
    %cst_87 = arith.constant 9.99999996E-13 : f32
    %87 = vector.broadcast %cst_87 : f32 to vector<1x1xf32>
    %88 = arith.addf %86, %87 : vector<1x1xf32>
    %89 = math.rsqrt %88 : vector<1x1xf32>
    %90 = vector.broadcast %89 : vector<1x1xf32> to vector<4x256xf32>
    %91 = arith.mulf %58, %90 : vector<4x256xf32>
    %c0_i32 = arith.constant 0 : i32
    %92 = arith.addi %0, %c0_i32 : i32
    %93 = arith.index_cast %92 : i32 to index
    %94 = memref.load %arg6[%93] : memref<2xf32, #tpu.memory_space<smem>>
    %95 = vector.broadcast %94 : f32 to vector<1x1xf32>
    %c0_i32_88 = arith.constant 0 : i32
    %96 = arith.addi %0, %c0_i32_88 : i32
    %97 = arith.index_cast %96 : i32 to index
    %98 = memref.load %arg5[%97] : memref<2xf32, #tpu.memory_space<smem>>
    %99 = vector.broadcast %98 : f32 to vector<1x1xf32>
    %100 = math.sqrt %95 : vector<1x1xf32>
    %101 = vector.broadcast %100 : vector<1x1xf32> to vector<4x256xf32>
    %102 = arith.mulf %101, %91 : vector<4x256xf32>
    %103 = arith.subf %41, %102 : vector<4x256xf32>
    %104 = math.rsqrt %99 : vector<1x1xf32>
    %105 = vector.broadcast %104 : vector<1x1xf32> to vector<4x256xf32>
    %106 = arith.mulf %103, %105 : vector<4x256xf32>
    %c0_89 = arith.constant 0 : index
    %c0_90 = arith.constant 0 : index
    %c0_91 = arith.constant 0 : index
    %107 = vector.load %arg31[%c0_89, %c0_90, %c0_91] : memref<2x4x256xf32, #tpu.memory_space<vmem>>, vector<1x4x256xf32>
    %108 = vector.shape_cast %107 : vector<1x4x256xf32> to vector<4x256xf32>
    %109 = vector.shape_cast %106 : vector<4x256xf32> to vector<1x4x256xf32>
    tpu.vector_store %arg31[%c0_89, %c0_90, %c0_91], %109 {strides = array<i32>} : memref<2x4x256xf32, #tpu.memory_space<vmem>>, vector<1x4x256xf32>,
    %c0_92 = arith.constant 0 : index
    %c0_93 = arith.constant 0 : index
    %110 = vector.load %arg33[%c0_92, %c0_93] : memref<8x256xf32, #tpu.memory_space<vmem>>, vector<4x256xf32>
    tpu.vector_store %arg33[%c0_92, %c0_93], %106 {strides = array<i32>} : memref<8x256xf32, #tpu.memory_space<vmem>>, vector<4x256xf32>,
    %c0_94 = arith.constant 0 : index
    %c0_95 = arith.constant 0 : index
    %111 = vector.load %arg23[%c0_94, %c0_95] : memref<32x8xf32, #tpu.memory_space<vmem>>, vector<32x8xf32>
    %c0_96 = arith.constant 0 : index
    %c0_97 = arith.constant 0 : index
    %112 = vector.load %arg33[%c0_96, %c0_97] : memref<8x256xf32, #tpu.memory_space<vmem>>, vector<8x256xf32>
    %cst_98 = arith.constant dense<0.000000e+00> : vector<32x256xf32>
    %113 = tpu.matmul %111, %112, %cst_98 {dimension_numbers = #tpu.dot_dimension_numbers<[1], [0], [0], [1], [0, 0, 1, 1], [], []>} : vector<32x8xf32>, vector<8x256xf32>, vector<32x256xf32> -> vector<32x256xf32>
    %c0_99 = arith.constant 0 : index
    %c0_100 = arith.constant 0 : index
    %114 = vector.load %arg24[%c0_99, %c0_100] : memref<32x1xf32, #tpu.memory_space<vmem>>, vector<32x1xf32>
    %115 = vector.broadcast %114 : vector<32x1xf32> to vector<32x256xf32>
    %116 = arith.addf %113, %115 : vector<32x256xf32>
    %cst_101 = arith.constant 0.000000e+00 : f32
    %117 = vector.broadcast %cst_101 : f32 to vector<32x256xf32>
    %118 = arith.maximumf %116, %117 : vector<32x256xf32>
    %c0_102 = arith.constant 0 : index
    %c0_103 = arith.constant 0 : index
    %119 = vector.load %arg25[%c0_102, %c0_103] : memref<4x32xf32, #tpu.memory_space<vmem>>, vector<4x32xf32>
    %cst_104 = arith.constant dense<0.000000e+00> : vector<4x256xf32>
    %120 = tpu.matmul %119, %118, %cst_104 {dimension_numbers = #tpu.dot_dimension_numbers<[1], [0], [0], [1], [0, 0, 1, 1], [], []>} : vector<4x32xf32>, vector<32x256xf32>, vector<4x256xf32> -> vector<4x256xf32>
    %c0_105 = arith.constant 0 : index
    %c0_106 = arith.constant 0 : index
    %121 = vector.load %arg26[%c0_105, %c0_106] : memref<4x1xf32, #tpu.memory_space<vmem>>, vector<4x1xf32>
    %122 = vector.broadcast %121 : vector<4x1xf32> to vector<4x256xf32>
    %123 = arith.addf %120, %122 : vector<4x256xf32>
    %c0_107 = arith.constant 0 : index
    %c0_108 = arith.constant 0 : index
    %c0_109 = arith.constant 0 : index
    %124 = vector.load %arg32[%c0_107, %c0_108, %c0_109] : memref<2x4x256xf32, #tpu.memory_space<vmem>>, vector<1x4x256xf32>
    %125 = vector.shape_cast %124 : vector<1x4x256xf32> to vector<4x256xf32>
    %126 = vector.shape_cast %123 : vector<4x256xf32> to vector<1x4x256xf32>
    tpu.vector_store %arg32[%c0_107, %c0_108, %c0_109], %126 {strides = array<i32>} : memref<2x4x256xf32, #tpu.memory_space<vmem>>, vector<1x4x256xf32>,
    %c1 = arith.constant 1 : index
    %c0_110 = arith.constant 0 : index
    %c0_111 = arith.constant 0 : index
    %127 = vector.load %arg2[%c1, %c0_110, %c0_111] : memref<2x4x256xf32, #tpu.memory_space<vmem>>, vector<1x4x256xf32>
    %128 = vector.shape_cast %127 : vector<1x4x256xf32> to vector<4x256xf32>
    %c4_112 = arith.constant 4 : index
    %c0_113 = arith.constant 0 : index
    %129 = vector.load %arg33[%c4_112, %c0_113] : memref<8x256xf32, #tpu.memory_space<vmem>>, vector<4x256xf32>
    tpu.vector_store %arg33[%c4_112, %c0_113], %128 {strides = array<i32>} : memref<8x256xf32, #tpu.memory_space<vmem>>, vector<4x256xf32>,
    %c1_114 = arith.constant 1 : index
    %c0_115 = arith.constant 0 : index
    %c0_116 = arith.constant 0 : index
    %130 = vector.load %arg1[%c1_114, %c0_115, %c0_116] : memref<2x4x256xf32, #tpu.memory_space<vmem>>, vector<1x4x256xf32>
    %131 = vector.shape_cast %130 : vector<1x4x256xf32> to vector<4x256xf32>
    %c0_117 = arith.constant 0 : index
    %c0_118 = arith.constant 0 : index
    %132 = vector.load %arg33[%c0_117, %c0_118] : memref<8x256xf32, #tpu.memory_space<vmem>>, vector<4x256xf32>
    tpu.vector_store %arg33[%c0_117, %c0_118], %131 {strides = array<i32>} : memref<8x256xf32, #tpu.memory_space<vmem>>, vector<4x256xf32>,
    %c0_119 = arith.constant 0 : index
    %c0_120 = arith.constant 0 : index
    %133 = vector.load %arg7[%c0_119, %c0_120] : memref<32x8xf32, #tpu.memory_space<vmem>>, vector<32x8xf32>
    %c0_121 = arith.constant 0 : index
    %c0_122 = arith.constant 0 : index
    %134 = vector.load %arg33[%c0_121, %c0_122] : memref<8x256xf32, #tpu.memory_space<vmem>>, vector<8x256xf32>
    %cst_123 = arith.constant dense<0.000000e+00> : vector<32x256xf32>
    %135 = tpu.matmul %133, %134, %cst_123 {dimension_numbers = #tpu.dot_dimension_numbers<[1], [0], [0], [1], [0, 0, 1, 1], [], []>} : vector<32x8xf32>, vector<8x256xf32>, vector<32x256xf32> -> vector<32x256xf32>
    %c0_124 = arith.constant 0 : index
    %c0_125 = arith.constant 0 : index
    %136 = vector.load %arg8[%c0_124, %c0_125] : memref<32x1xf32, #tpu.memory_space<vmem>>, vector<32x1xf32>
    %137 = vector.broadcast %136 : vector<32x1xf32> to vector<32x256xf32>
    %138 = arith.addf %135, %137 : vector<32x256xf32>
    %cst_126 = arith.constant 0.000000e+00 : f32
    %139 = vector.broadcast %cst_126 : f32 to vector<32x256xf32>
    %140 = arith.maximumf %138, %139 : vector<32x256xf32>
    %c0_127 = arith.constant 0 : index
    %c0_128 = arith.constant 0 : index
    %141 = vector.load %arg9[%c0_127, %c0_128] : memref<4x32xf32, #tpu.memory_space<vmem>>, vector<4x32xf32>
    %cst_129 = arith.constant dense<0.000000e+00> : vector<4x256xf32>
    %142 = tpu.matmul %141, %140, %cst_129 {dimension_numbers = #tpu.dot_dimension_numbers<[1], [0], [0], [1], [0, 0, 1, 1], [], []>} : vector<4x32xf32>, vector<32x256xf32>, vector<4x256xf32> -> vector<4x256xf32>
    %c0_130 = arith.constant 0 : index
    %c0_131 = arith.constant 0 : index
    %143 = vector.load %arg10[%c0_130, %c0_131] : memref<4x1xf32, #tpu.memory_space<vmem>>, vector<4x1xf32>
    %144 = vector.broadcast %143 : vector<4x1xf32> to vector<4x256xf32>
    %145 = arith.addf %142, %144 : vector<4x256xf32>
    %c1_132 = arith.constant 1 : index
    %c0_133 = arith.constant 0 : index
    %c0_134 = arith.constant 0 : index
    %146 = vector.load %arg27[%c1_132, %c0_133, %c0_134] : memref<2x4x256xf32, #tpu.memory_space<vmem>>, vector<1x4x256xf32>
    %147 = vector.shape_cast %146 : vector<1x4x256xf32> to vector<4x256xf32>
    %148 = vector.shape_cast %145 : vector<4x256xf32> to vector<1x4x256xf32>
    tpu.vector_store %arg27[%c1_132, %c0_133, %c0_134], %148 {strides = array<i32>} : memref<2x4x256xf32, #tpu.memory_space<vmem>>, vector<1x4x256xf32>,
    %c0_135 = arith.constant 0 : index
    %c0_136 = arith.constant 0 : index
    %149 = vector.load %arg33[%c0_135, %c0_136] : memref<8x256xf32, #tpu.memory_space<vmem>>, vector<4x256xf32>
    tpu.vector_store %arg33[%c0_135, %c0_136], %145 {strides = array<i32>} : memref<8x256xf32, #tpu.memory_space<vmem>>, vector<4x256xf32>,
    %c0_137 = arith.constant 0 : index
    %c0_138 = arith.constant 0 : index
    %150 = vector.load %arg11[%c0_137, %c0_138] : memref<32x8xf32, #tpu.memory_space<vmem>>, vector<32x8xf32>
    %c0_139 = arith.constant 0 : index
    %c0_140 = arith.constant 0 : index
    %151 = vector.load %arg33[%c0_139, %c0_140] : memref<8x256xf32, #tpu.memory_space<vmem>>, vector<8x256xf32>
    %cst_141 = arith.constant dense<0.000000e+00> : vector<32x256xf32>
    %152 = tpu.matmul %150, %151, %cst_141 {dimension_numbers = #tpu.dot_dimension_numbers<[1], [0], [0], [1], [0, 0, 1, 1], [], []>} : vector<32x8xf32>, vector<8x256xf32>, vector<32x256xf32> -> vector<32x256xf32>
    %c0_142 = arith.constant 0 : index
    %c0_143 = arith.constant 0 : index
    %153 = vector.load %arg12[%c0_142, %c0_143] : memref<32x1xf32, #tpu.memory_space<vmem>>, vector<32x1xf32>
    %154 = vector.broadcast %153 : vector<32x1xf32> to vector<32x256xf32>
    %155 = arith.addf %152, %154 : vector<32x256xf32>
    %cst_144 = arith.constant 0.000000e+00 : f32
    %156 = vector.broadcast %cst_144 : f32 to vector<32x256xf32>
    %157 = arith.maximumf %155, %156 : vector<32x256xf32>
    %c0_145 = arith.constant 0 : index
    %c0_146 = arith.constant 0 : index
    %158 = vector.load %arg13[%c0_145, %c0_146] : memref<4x32xf32, #tpu.memory_space<vmem>>, vector<4x32xf32>
    %cst_147 = arith.constant dense<0.000000e+00> : vector<4x256xf32>
    %159 = tpu.matmul %158, %157, %cst_147 {dimension_numbers = #tpu.dot_dimension_numbers<[1], [0], [0], [1], [0, 0, 1, 1], [], []>} : vector<4x32xf32>, vector<32x256xf32>, vector<4x256xf32> -> vector<4x256xf32>
    %c0_148 = arith.constant 0 : index
    %c0_149 = arith.constant 0 : index
    %160 = vector.load %arg14[%c0_148, %c0_149] : memref<4x1xf32, #tpu.memory_space<vmem>>, vector<4x1xf32>
    %161 = vector.broadcast %160 : vector<4x1xf32> to vector<4x256xf32>
    %162 = arith.addf %159, %161 : vector<4x256xf32>
    %c1_150 = arith.constant 1 : index
    %c0_151 = arith.constant 0 : index
    %c0_152 = arith.constant 0 : index
    %163 = vector.load %arg28[%c1_150, %c0_151, %c0_152] : memref<2x4x256xf32, #tpu.memory_space<vmem>>, vector<1x4x256xf32>
    %164 = vector.shape_cast %163 : vector<1x4x256xf32> to vector<4x256xf32>
    %165 = vector.shape_cast %162 : vector<4x256xf32> to vector<1x4x256xf32>
    tpu.vector_store %arg28[%c1_150, %c0_151, %c0_152], %165 {strides = array<i32>} : memref<2x4x256xf32, #tpu.memory_space<vmem>>, vector<1x4x256xf32>,
    %c1_153 = arith.constant 1 : index
    %c0_154 = arith.constant 0 : index
    %c0_155 = arith.constant 0 : index
    %166 = vector.load %arg3[%c1_153, %c0_154, %c0_155] : memref<2x4x256xf32, #tpu.memory_space<vmem>>, vector<1x4x256xf32>
    %167 = vector.shape_cast %166 : vector<1x4x256xf32> to vector<4x256xf32>
    %c1_156 = arith.constant 1 : index
    %c0_157 = arith.constant 0 : index
    %c0_158 = arith.constant 0 : index
    %168 = vector.load %arg4[%c1_156, %c0_157, %c0_158] : memref<2x4x256xf32, #tpu.memory_space<vmem>>, vector<1x4x256xf32>
    %169 = vector.shape_cast %168 : vector<1x4x256xf32> to vector<4x256xf32>
    %c4_159 = arith.constant 4 : index
    %c0_160 = arith.constant 0 : index
    %170 = vector.load %arg33[%c4_159, %c0_160] : memref<8x256xf32, #tpu.memory_space<vmem>>, vector<4x256xf32>
    tpu.vector_store %arg33[%c4_159, %c0_160], %169 {strides = array<i32>} : memref<8x256xf32, #tpu.memory_space<vmem>>, vector<4x256xf32>,
    %c0_161 = arith.constant 0 : index
    %c0_162 = arith.constant 0 : index
    %171 = vector.load %arg33[%c0_161, %c0_162] : memref<8x256xf32, #tpu.memory_space<vmem>>, vector<4x256xf32>
    tpu.vector_store %arg33[%c0_161, %c0_162], %167 {strides = array<i32>} : memref<8x256xf32, #tpu.memory_space<vmem>>, vector<4x256xf32>,
    %c0_163 = arith.constant 0 : index
    %c0_164 = arith.constant 0 : index
    %172 = vector.load %arg15[%c0_163, %c0_164] : memref<32x8xf32, #tpu.memory_space<vmem>>, vector<32x8xf32>
    %c0_165 = arith.constant 0 : index
    %c0_166 = arith.constant 0 : index
    %173 = vector.load %arg33[%c0_165, %c0_166] : memref<8x256xf32, #tpu.memory_space<vmem>>, vector<8x256xf32>
    %cst_167 = arith.constant dense<0.000000e+00> : vector<32x256xf32>
    %174 = tpu.matmul %172, %173, %cst_167 {dimension_numbers = #tpu.dot_dimension_numbers<[1], [0], [0], [1], [0, 0, 1, 1], [], []>} : vector<32x8xf32>, vector<8x256xf32>, vector<32x256xf32> -> vector<32x256xf32>
    %c0_168 = arith.constant 0 : index
    %c0_169 = arith.constant 0 : index
    %175 = vector.load %arg16[%c0_168, %c0_169] : memref<32x1xf32, #tpu.memory_space<vmem>>, vector<32x1xf32>
    %176 = vector.broadcast %175 : vector<32x1xf32> to vector<32x256xf32>
    %177 = arith.addf %174, %176 : vector<32x256xf32>
    %cst_170 = arith.constant 0.000000e+00 : f32
    %178 = vector.broadcast %cst_170 : f32 to vector<32x256xf32>
    %179 = arith.maximumf %177, %178 : vector<32x256xf32>
    %c0_171 = arith.constant 0 : index
    %c0_172 = arith.constant 0 : index
    %180 = vector.load %arg17[%c0_171, %c0_172] : memref<4x32xf32, #tpu.memory_space<vmem>>, vector<4x32xf32>
    %cst_173 = arith.constant dense<0.000000e+00> : vector<4x256xf32>
    %181 = tpu.matmul %180, %179, %cst_173 {dimension_numbers = #tpu.dot_dimension_numbers<[1], [0], [0], [1], [0, 0, 1, 1], [], []>} : vector<4x32xf32>, vector<32x256xf32>, vector<4x256xf32> -> vector<4x256xf32>
    %c0_174 = arith.constant 0 : index
    %c0_175 = arith.constant 0 : index
    %182 = vector.load %arg18[%c0_174, %c0_175] : memref<4x1xf32, #tpu.memory_space<vmem>>, vector<4x1xf32>
    %183 = vector.broadcast %182 : vector<4x1xf32> to vector<4x256xf32>
    %184 = arith.addf %181, %183 : vector<4x256xf32>
    %c1_176 = arith.constant 1 : index
    %c0_177 = arith.constant 0 : index
    %c0_178 = arith.constant 0 : index
    %185 = vector.load %arg29[%c1_176, %c0_177, %c0_178] : memref<2x4x256xf32, #tpu.memory_space<vmem>>, vector<1x4x256xf32>
    %186 = vector.shape_cast %185 : vector<1x4x256xf32> to vector<4x256xf32>
    %187 = vector.shape_cast %184 : vector<4x256xf32> to vector<1x4x256xf32>
    tpu.vector_store %arg29[%c1_176, %c0_177, %c0_178], %187 {strides = array<i32>} : memref<2x4x256xf32, #tpu.memory_space<vmem>>, vector<1x4x256xf32>,
    %c0_179 = arith.constant 0 : index
    %c0_180 = arith.constant 0 : index
    %188 = vector.load %arg33[%c0_179, %c0_180] : memref<8x256xf32, #tpu.memory_space<vmem>>, vector<4x256xf32>
    tpu.vector_store %arg33[%c0_179, %c0_180], %184 {strides = array<i32>} : memref<8x256xf32, #tpu.memory_space<vmem>>, vector<4x256xf32>,
    %c0_181 = arith.constant 0 : index
    %c0_182 = arith.constant 0 : index
    %189 = vector.load %arg19[%c0_181, %c0_182] : memref<32x8xf32, #tpu.memory_space<vmem>>, vector<32x8xf32>
    %c0_183 = arith.constant 0 : index
    %c0_184 = arith.constant 0 : index
    %190 = vector.load %arg33[%c0_183, %c0_184] : memref<8x256xf32, #tpu.memory_space<vmem>>, vector<8x256xf32>
    %cst_185 = arith.constant dense<0.000000e+00> : vector<32x256xf32>
    %191 = tpu.matmul %189, %190, %cst_185 {dimension_numbers = #tpu.dot_dimension_numbers<[1], [0], [0], [1], [0, 0, 1, 1], [], []>} : vector<32x8xf32>, vector<8x256xf32>, vector<32x256xf32> -> vector<32x256xf32>
    %c0_186 = arith.constant 0 : index
    %c0_187 = arith.constant 0 : index
    %192 = vector.load %arg20[%c0_186, %c0_187] : memref<32x1xf32, #tpu.memory_space<vmem>>, vector<32x1xf32>
    %193 = vector.broadcast %192 : vector<32x1xf32> to vector<32x256xf32>
    %194 = arith.addf %191, %193 : vector<32x256xf32>
    %cst_188 = arith.constant 0.000000e+00 : f32
    %195 = vector.broadcast %cst_188 : f32 to vector<32x256xf32>
    %196 = arith.maximumf %194, %195 : vector<32x256xf32>
    %c0_189 = arith.constant 0 : index
    %c0_190 = arith.constant 0 : index
    %197 = vector.load %arg21[%c0_189, %c0_190] : memref<4x32xf32, #tpu.memory_space<vmem>>, vector<4x32xf32>
    %cst_191 = arith.constant dense<0.000000e+00> : vector<4x256xf32>
    %198 = tpu.matmul %197, %196, %cst_191 {dimension_numbers = #tpu.dot_dimension_numbers<[1], [0], [0], [1], [0, 0, 1, 1], [], []>} : vector<4x32xf32>, vector<32x256xf32>, vector<4x256xf32> -> vector<4x256xf32>
    %c0_192 = arith.constant 0 : index
    %c0_193 = arith.constant 0 : index
    %199 = vector.load %arg22[%c0_192, %c0_193] : memref<4x1xf32, #tpu.memory_space<vmem>>, vector<4x1xf32>
    %200 = vector.broadcast %199 : vector<4x1xf32> to vector<4x256xf32>
    %201 = arith.addf %198, %200 : vector<4x256xf32>
    %c1_194 = arith.constant 1 : index
    %c0_195 = arith.constant 0 : index
    %c0_196 = arith.constant 0 : index
    %202 = vector.load %arg30[%c1_194, %c0_195, %c0_196] : memref<2x4x256xf32, #tpu.memory_space<vmem>>, vector<1x4x256xf32>
    %203 = vector.shape_cast %202 : vector<1x4x256xf32> to vector<4x256xf32>
    %204 = vector.shape_cast %201 : vector<4x256xf32> to vector<1x4x256xf32>
    tpu.vector_store %arg30[%c1_194, %c0_195, %c0_196], %204 {strides = array<i32>} : memref<2x4x256xf32, #tpu.memory_space<vmem>>, vector<1x4x256xf32>,
    %205 = arith.mulf %184, %184 : vector<4x256xf32>
    %206 = vector.shape_cast %205 : vector<4x256xf32> to vector<1x4x256xf32>
    %cst_197 = arith.constant dense<0.000000e+00> : vector<1xf32>
    %207 = vector.multi_reduction <add>, %206, %cst_197 [1, 2] : vector<1x4x256xf32> to vector<1xf32>
    %208 = vector.shape_cast %207 : vector<1xf32> to vector<1x1x1xf32>
    %209 = vector.extract %208[0, 0, 0] : f32 from vector<1x1x1xf32>
    %210 = vector.broadcast %209 : f32 to vector<1x1xf32>
    %cst_198 = arith.constant 1.024000e+03 : f32
    %211 = vector.broadcast %cst_198 : f32 to vector<1x1xf32>
    %212 = arith.divf %210, %211 : vector<1x1xf32>
    %cst_199 = arith.constant 9.99999996E-13 : f32
    %213 = vector.broadcast %cst_199 : f32 to vector<1x1xf32>
    %214 = arith.addf %212, %213 : vector<1x1xf32>
    %215 = math.rsqrt %214 : vector<1x1xf32>
    %216 = vector.broadcast %215 : vector<1x1xf32> to vector<4x256xf32>
    %217 = arith.mulf %184, %216 : vector<4x256xf32>
    %c1_i32 = arith.constant 1 : i32
    %218 = arith.addi %0, %c1_i32 : i32
    %219 = arith.index_cast %218 : i32 to index
    %220 = memref.load %arg6[%219] : memref<2xf32, #tpu.memory_space<smem>>
    %221 = vector.broadcast %220 : f32 to vector<1x1xf32>
    %c1_i32_200 = arith.constant 1 : i32
    %222 = arith.addi %0, %c1_i32_200 : i32
    %223 = arith.index_cast %222 : i32 to index
    %224 = memref.load %arg5[%223] : memref<2xf32, #tpu.memory_space<smem>>
    %225 = vector.broadcast %224 : f32 to vector<1x1xf32>
    %226 = math.sqrt %221 : vector<1x1xf32>
    %227 = vector.broadcast %226 : vector<1x1xf32> to vector<4x256xf32>
    %228 = arith.mulf %227, %217 : vector<4x256xf32>
    %229 = arith.subf %167, %228 : vector<4x256xf32>
    %230 = math.rsqrt %225 : vector<1x1xf32>
    %231 = vector.broadcast %230 : vector<1x1xf32> to vector<4x256xf32>
    %232 = arith.mulf %229, %231 : vector<4x256xf32>
    %c1_201 = arith.constant 1 : index
    %c0_202 = arith.constant 0 : index
    %c0_203 = arith.constant 0 : index
    %233 = vector.load %arg31[%c1_201, %c0_202, %c0_203] : memref<2x4x256xf32, #tpu.memory_space<vmem>>, vector<1x4x256xf32>
    %234 = vector.shape_cast %233 : vector<1x4x256xf32> to vector<4x256xf32>
    %235 = vector.shape_cast %232 : vector<4x256xf32> to vector<1x4x256xf32>
    tpu.vector_store %arg31[%c1_201, %c0_202, %c0_203], %235 {strides = array<i32>} : memref<2x4x256xf32, #tpu.memory_space<vmem>>, vector<1x4x256xf32>,
    %c0_204 = arith.constant 0 : index
    %c0_205 = arith.constant 0 : index
    %236 = vector.load %arg33[%c0_204, %c0_205] : memref<8x256xf32, #tpu.memory_space<vmem>>, vector<4x256xf32>
    tpu.vector_store %arg33[%c0_204, %c0_205], %232 {strides = array<i32>} : memref<8x256xf32, #tpu.memory_space<vmem>>, vector<4x256xf32>,
    %c0_206 = arith.constant 0 : index
    %c0_207 = arith.constant 0 : index
    %237 = vector.load %arg23[%c0_206, %c0_207] : memref<32x8xf32, #tpu.memory_space<vmem>>, vector<32x8xf32>
    %c0_208 = arith.constant 0 : index
    %c0_209 = arith.constant 0 : index
    %238 = vector.load %arg33[%c0_208, %c0_209] : memref<8x256xf32, #tpu.memory_space<vmem>>, vector<8x256xf32>
    %cst_210 = arith.constant dense<0.000000e+00> : vector<32x256xf32>
    %239 = tpu.matmul %237, %238, %cst_210 {dimension_numbers = #tpu.dot_dimension_numbers<[1], [0], [0], [1], [0, 0, 1, 1], [], []>} : vector<32x8xf32>, vector<8x256xf32>, vector<32x256xf32> -> vector<32x256xf32>
    %c0_211 = arith.constant 0 : index
    %c0_212 = arith.constant 0 : index
    %240 = vector.load %arg24[%c0_211, %c0_212] : memref<32x1xf32, #tpu.memory_space<vmem>>, vector<32x1xf32>
    %241 = vector.broadcast %240 : vector<32x1xf32> to vector<32x256xf32>
    %242 = arith.addf %239, %241 : vector<32x256xf32>
    %cst_213 = arith.constant 0.000000e+00 : f32
    %243 = vector.broadcast %cst_213 : f32 to vector<32x256xf32>
    %244 = arith.maximumf %242, %243 : vector<32x256xf32>
    %c0_214 = arith.constant 0 : index
    %c0_215 = arith.constant 0 : index
    %245 = vector.load %arg25[%c0_214, %c0_215] : memref<4x32xf32, #tpu.memory_space<vmem>>, vector<4x32xf32>
    %cst_216 = arith.constant dense<0.000000e+00> : vector<4x256xf32>
    %246 = tpu.matmul %245, %244, %cst_216 {dimension_numbers = #tpu.dot_dimension_numbers<[1], [0], [0], [1], [0, 0, 1, 1], [], []>} : vector<4x32xf32>, vector<32x256xf32>, vector<4x256xf32> -> vector<4x256xf32>
    %c0_217 = arith.constant 0 : index
    %c0_218 = arith.constant 0 : index
    %247 = vector.load %arg26[%c0_217, %c0_218] : memref<4x1xf32, #tpu.memory_space<vmem>>, vector<4x1xf32>
    %248 = vector.broadcast %247 : vector<4x1xf32> to vector<4x256xf32>
    %249 = arith.addf %246, %248 : vector<4x256xf32>
    %c1_219 = arith.constant 1 : index
    %c0_220 = arith.constant 0 : index
    %c0_221 = arith.constant 0 : index
    %250 = vector.load %arg32[%c1_219, %c0_220, %c0_221] : memref<2x4x256xf32, #tpu.memory_space<vmem>>, vector<1x4x256xf32>
    %251 = vector.shape_cast %250 : vector<1x4x256xf32> to vector<4x256xf32>
    %252 = vector.shape_cast %249 : vector<4x256xf32> to vector<1x4x256xf32>
    tpu.vector_store %arg32[%c1_219, %c0_220, %c0_221], %252 {strides = array<i32>} : memref<2x4x256xf32, #tpu.memory_space<vmem>>, vector<1x4x256xf32>,
    return
  }
  func.func @transform_0(%arg0: i32) -> (i32, i32, i32) {
    %c0_i32 = arith.constant 0 : i32
    %c0_i32_0 = arith.constant 0 : i32
    %c0_i32_1 = arith.constant 0 : i32
    return %arg0, %c0_i32, %c0_i32_0 : i32, i32, i32
  }
  func.func @transform_1(%arg0: i32) -> (i32, i32, i32) {
    %c0_i32 = arith.constant 0 : i32
    %c0_i32_0 = arith.constant 0 : i32
    %c0_i32_1 = arith.constant 0 : i32
    return %arg0, %c0_i32, %c0_i32_0 : i32, i32, i32
  }
  func.func @transform_2(%arg0: i32) -> (i32, i32, i32) {
    %c0_i32 = arith.constant 0 : i32
    %c0_i32_0 = arith.constant 0 : i32
    %c0_i32_1 = arith.constant 0 : i32
    return %arg0, %c0_i32, %c0_i32_0 : i32, i32, i32
  }
  func.func @transform_3(%arg0: i32) -> (i32, i32, i32) {
    %c0_i32 = arith.constant 0 : i32
    %c0_i32_0 = arith.constant 0 : i32
    %c0_i32_1 = arith.constant 0 : i32
    return %arg0, %c0_i32, %c0_i32_0 : i32, i32, i32
  }
  func.func @transform_4(%arg0: i32) -> i32 {
    %c0_i32 = arith.constant 0 : i32
    %c0_i32_0 = arith.constant 0 : i32
    return %c0_i32 : i32
  }
  func.func @transform_5(%arg0: i32) -> i32 {
    %c0_i32 = arith.constant 0 : i32
    %c0_i32_0 = arith.constant 0 : i32
    return %c0_i32 : i32
  }
  func.func @transform_6(%arg0: i32) -> (i32, i32) {
    %c0_i32 = arith.constant 0 : i32
    %c0_i32_0 = arith.constant 0 : i32
    %c0_i32_1 = arith.constant 0 : i32
    return %c0_i32, %c0_i32_0 : i32, i32
  }
  func.func @transform_7(%arg0: i32) -> (i32, i32) {
    %c0_i32 = arith.constant 0 : i32
    %c0_i32_0 = arith.constant 0 : i32
    %c0_i32_1 = arith.constant 0 : i32
    return %c0_i32, %c0_i32_0 : i32, i32
  }
  func.func @transform_8(%arg0: i32) -> (i32, i32) {
    %c0_i32 = arith.constant 0 : i32
    %c0_i32_0 = arith.constant 0 : i32
    %c0_i32_1 = arith.constant 0 : i32
    return %c0_i32, %c0_i32_0 : i32, i32
  }
  func.func @transform_9(%arg0: i32) -> (i32, i32) {
    %c0_i32 = arith.constant 0 : i32
    %c0_i32_0 = arith.constant 0 : i32
    %c0_i32_1 = arith.constant 0 : i32
    return %c0_i32, %c0_i32_0 : i32, i32
  }
  func.func @transform_10(%arg0: i32) -> (i32, i32) {
    %c0_i32 = arith.constant 0 : i32
    %c0_i32_0 = arith.constant 0 : i32
    %c0_i32_1 = arith.constant 0 : i32
    return %c0_i32, %c0_i32_0 : i32, i32
  }
  func.func @transform_11(%arg0: i32) -> (i32, i32) {
    %c0_i32 = arith.constant 0 : i32
    %c0_i32_0 = arith.constant 0 : i32
    %c0_i32_1 = arith.constant 0 : i32
    return %c0_i32, %c0_i32_0 : i32, i32
  }
  func.func @transform_12(%arg0: i32) -> (i32, i32) {
    %c0_i32 = arith.constant 0 : i32
    %c0_i32_0 = arith.constant 0 : i32
    %c0_i32_1 = arith.constant 0 : i32
    return %c0_i32, %c0_i32_0 : i32, i32
  }
  func.func @transform_13(%arg0: i32) -> (i32, i32) {
    %c0_i32 = arith.constant 0 : i32
    %c0_i32_0 = arith.constant 0 : i32
    %c0_i32_1 = arith.constant 0 : i32
    return %c0_i32, %c0_i32_0 : i32, i32
  }
  func.func @transform_14(%arg0: i32) -> (i32, i32) {
    %c0_i32 = arith.constant 0 : i32
    %c0_i32_0 = arith.constant 0 : i32
    %c0_i32_1 = arith.constant 0 : i32
    return %c0_i32, %c0_i32_0 : i32, i32
  }
  func.func @transform_15(%arg0: i32) -> (i32, i32) {
    %c0_i32 = arith.constant 0 : i32
    %c0_i32_0 = arith.constant 0 : i32
    %c0_i32_1 = arith.constant 0 : i32
    return %c0_i32, %c0_i32_0 : i32, i32
  }
  func.func @transform_16(%arg0: i32) -> (i32, i32) {
    %c0_i32 = arith.constant 0 : i32
    %c0_i32_0 = arith.constant 0 : i32
    %c0_i32_1 = arith.constant 0 : i32
    return %c0_i32, %c0_i32_0 : i32, i32
  }
  func.func @transform_17(%arg0: i32) -> (i32, i32) {
    %c0_i32 = arith.constant 0 : i32
    %c0_i32_0 = arith.constant 0 : i32
    %c0_i32_1 = arith.constant 0 : i32
    return %c0_i32, %c0_i32_0 : i32, i32
  }
  func.func @transform_18(%arg0: i32) -> (i32, i32) {
    %c0_i32 = arith.constant 0 : i32
    %c0_i32_0 = arith.constant 0 : i32
    %c0_i32_1 = arith.constant 0 : i32
    return %c0_i32, %c0_i32_0 : i32, i32
  }
  func.func @transform_19(%arg0: i32) -> (i32, i32) {
    %c0_i32 = arith.constant 0 : i32
    %c0_i32_0 = arith.constant 0 : i32
    %c0_i32_1 = arith.constant 0 : i32
    return %c0_i32, %c0_i32_0 : i32, i32
  }
  func.func @transform_20(%arg0: i32) -> (i32, i32) {
    %c0_i32 = arith.constant 0 : i32
    %c0_i32_0 = arith.constant 0 : i32
    %c0_i32_1 = arith.constant 0 : i32
    return %c0_i32, %c0_i32_0 : i32, i32
  }
  func.func @transform_21(%arg0: i32) -> (i32, i32) {
    %c0_i32 = arith.constant 0 : i32
    %c0_i32_0 = arith.constant 0 : i32
    %c0_i32_1 = arith.constant 0 : i32
    return %c0_i32, %c0_i32_0 : i32, i32
  }
  func.func @transform_22(%arg0: i32) -> (i32, i32) {
    %c0_i32 = arith.constant 0 : i32
    %c0_i32_0 = arith.constant 0 : i32
    %c0_i32_1 = arith.constant 0 : i32
    return %c0_i32, %c0_i32_0 : i32, i32
  }
  func.func @transform_23(%arg0: i32) -> (i32, i32) {
    %c0_i32 = arith.constant 0 : i32
    %c0_i32_0 = arith.constant 0 : i32
    %c0_i32_1 = arith.constant 0 : i32
    return %c0_i32, %c0_i32_0 : i32, i32
  }
  func.func @transform_24(%arg0: i32) -> (i32, i32) {
    %c0_i32 = arith.constant 0 : i32
    %c0_i32_0 = arith.constant 0 : i32
    %c0_i32_1 = arith.constant 0 : i32
    return %c0_i32, %c0_i32_0 : i32, i32
  }
  func.func @transform_25(%arg0: i32) -> (i32, i32) {
    %c0_i32 = arith.constant 0 : i32
    %c0_i32_0 = arith.constant 0 : i32
    %c0_i32_1 = arith.constant 0 : i32
    return %c0_i32, %c0_i32_0 : i32, i32
  }
  func.func @transform_26(%arg0: i32) -> (i32, i32, i32) {
    %c0_i32 = arith.constant 0 : i32
    %c0_i32_0 = arith.constant 0 : i32
    %c0_i32_1 = arith.constant 0 : i32
    return %arg0, %c0_i32, %c0_i32_0 : i32, i32, i32
  }
  func.func @transform_27(%arg0: i32) -> (i32, i32, i32) {
    %c0_i32 = arith.constant 0 : i32
    %c0_i32_0 = arith.constant 0 : i32
    %c0_i32_1 = arith.constant 0 : i32
    return %arg0, %c0_i32, %c0_i32_0 : i32, i32, i32
  }
  func.func @transform_28(%arg0: i32) -> (i32, i32, i32) {
    %c0_i32 = arith.constant 0 : i32
    %c0_i32_0 = arith.constant 0 : i32
    %c0_i32_1 = arith.constant 0 : i32
    return %arg0, %c0_i32, %c0_i32_0 : i32, i32, i32
  }
  func.func @transform_29(%arg0: i32) -> (i32, i32, i32) {
    %c0_i32 = arith.constant 0 : i32
    %c0_i32_0 = arith.constant 0 : i32
    %c0_i32_1 = arith.constant 0 : i32
    return %arg0, %c0_i32, %c0_i32_0 : i32, i32, i32
  }
  func.func @transform_30(%arg0: i32) -> (i32, i32, i32) {
    %c0_i32 = arith.constant 0 : i32
    %c0_i32_0 = arith.constant 0 : i32
    %c0_i32_1 = arith.constant 0 : i32
    return %arg0, %c0_i32, %c0_i32_0 : i32, i32, i32
  }
  func.func @transform_31(%arg0: i32) -> (i32, i32, i32) {
    %c0_i32 = arith.constant 0 : i32
    %c0_i32_0 = arith.constant 0 : i32
    %c0_i32_1 = arith.constant 0 : i32
    return %arg0, %c0_i32, %c0_i32_0 : i32, i32, i32
  }
}

</mosaic_0001>

<bundles_post_ra>
// kernel: rx_scheme_forward.1
= control target key start
LH: loop header
LB: loop body
LE: loop exit
PB: predicated region body
PF: predicated region fallthrough
CT: control target
= control target key end

     0   :  { %s2848_s6 = smov 1   ;;  %s2849_s10 = smov 2   ;;  %s3456_s0 = inlined_call_operand.smem [shape: u32[32], index: -1, kind: input, shape index: {}] }
   0x1   :  { %s2891_s5 = sld [smem:[%s3456_s0]]   ;;  %s2850_s14 = smov 3  }
   0x2   :  { %s2896_s9 = sld [smem:[%s3456_s0 + %s2848_s6]]   ;;  %s2851_s18 = smov 4  }
   0x3   :  { %s2901_s13 = sld [smem:[%s3456_s0 + %s2849_s10]]   ;;  %s2852_s22 = smov 5  }
   0x4   :  { %s2906_s17 = sld [smem:[%s3456_s0 + %s2850_s14]]   ;;  %s2853_s26 = smov 6  }
   0x5   :  { %s2911_s21 = sld [smem:[%s3456_s0 + %s2851_s18]]   ;;  %s2854_s30 = smov 7  }
   0x6   :  { %s2916_s25 = sld [smem:[%s3456_s0 + %s2852_s22]]   ;;  %s2855_s4 = smov 8  }
   0x7   :  { %s2921_s29 = sld [smem:[%s3456_s0 + %s2853_s26]]   ;;  %s2856_s10 = smov 9  }
   0x8   :  { %s2926_s3 = sld [smem:[%s3456_s0 + %s2854_s30]]   ;;  %s2857_s15 = smov 10  }
   0x9   :  { %s2931_s8 = sld [smem:[%s3456_s0 + %s2855_s4]]   ;;  %s2858_s20 = smov 11  }
   0xa   :  { %3471 = sst [smem:[#allocation9_spill]] %s2906_s17  ;;  %s2859_s26 = smov 12  }
   0xb   :  { %s2936_s14 = sld [smem:[%s3456_s0 + %s2856_s10]]   ;;  %s2860_s1 = smov 13  }
   0xc   :  { %s2941_s19 = sld [smem:[%s3456_s0 + %s2857_s15]]   ;;  %s2861_s7 = smov 14  }
   0xd   :  { %s2946_s24 = sld [smem:[%s3456_s0 + %s2858_s20]]   ;;  %s2862_s15 = smov 15  }
   0xe   :  { %s2951_s30 = sld [smem:[%s3456_s0 + %s2859_s26]]   ;;  %s2863_s22 = smov 16  }
   0xf   :  { %s2956_s6 = sld [smem:[%s3456_s0 + %s2860_s1]]   ;;  %s2864_s28 = smov 17  }
  0x10   :  { %s2961_s12 = sld [smem:[%s3456_s0 + %s2861_s7]]   ;;  %s2865_s7 = smov 18  }
  0x11   :  { %s2966_s20 = sld [smem:[%s3456_s0 + %s2862_s15]]   ;;  %s2866_s15 = smov 19  }
  0x12   :  { %3472 = sst [smem:[#allocation10_spill]] %s2941_s19 }
  0x13   :  { %s2971_s27 = sld [smem:[%s3456_s0 + %s2863_s22]]   ;;  %s2867_s22 = smov 20  }
  0x14   :  { %3473 = sst [smem:[#allocation11_spill]] %s2951_s30 }
  0x15   :  { %3474 = sst [smem:[#allocation12_spill]] %s2956_s6 }
  0x16   :  { %3475 = sst [smem:[#allocation13_spill]] %s2961_s12 }
  0x17   :  { %s2976_s4 = sld [smem:[%s3456_s0 + %s2864_s28]]   ;;  %s2868_s28 = smov 21  }
  0x18   :  { %s2981_s6 = sld [smem:[%s3456_s0 + %s2865_s7]]   ;;  %s2869_s7 = smov 22  }
  0x19   :  { %3476 = sst [smem:[#allocation14_spill]] %s2971_s27 }
  0x1a   :  { %s2986_s12 = sld [smem:[%s3456_s0 + %s2866_s15]]   ;;  %s2870_s15 = smov 23  }
  0x1b   :  { %s2991_s27 = sld [smem:[%s3456_s0 + %s2867_s22]]   ;;  %s2871_s22 = smov 24  }
  0x1c   :  { %s2996_s30 = sld [smem:[%s3456_s0 + %s2868_s28]]   ;;  %s2872_s28 = smov 25  }
  0x1d   :  { %s3006_s17 = sld [smem:[%s3456_s0 + %s2870_s15]]   ;;  %s2874_s15 = smov 27  }
  0x1e   :  { %3477 = sst [smem:[#allocation15_spill]] %s2981_s6 }
  0x1f   :  { %s3001_s6 = sld [smem:[%s3456_s0 + %s2869_s7]]   ;;  %s2873_s7 = smov 26  }
  0x20   :  { %s3026_s19 = sld [smem:[%s3456_s0 + %s2874_s15]]   ;;  %s2878_s15 = smov 31  }
  0x21   :  { %3478 = sst [smem:[#allocation16_spill]] %s2991_s27 }
  0x22   :  { %3479 = sst [smem:[#allocation17_spill]] %s2996_s30 }
  0x23   :  { %s3011_s27 = sld [smem:[%s3456_s0 + %s2871_s22]]   ;;  %s2875_s22 = smov 28  }
  0x24   :  { %s3016_s30 = sld [smem:[%s3456_s0 + %s2872_s28]]   ;;  %s2876_s28 = smov 29  }
  0x25   :  { %3480 = sst [smem:[#allocation18_spill]] %s3001_s6 }
  0x26   :  { %s3021_s6 = sld [smem:[%s3456_s0 + %s2873_s7]]   ;;  %s2877_s7 = smov 30  }
  0x27   :  { %3484 = sst [smem:[#allocation22_spill]] %s3026_s19 }
  0x28   :  { %s3046_s19 = sld [smem:[%s3456_s0 + %s2878_s15]]  }
  0x29   :  { %3481 = sst [smem:[#allocation19_spill]] %s3011_s27 }
  0x2a   :  { %3482 = sst [smem:[#allocation20_spill]] %s3016_s30 }
  0x2b   :  { %s3031_s27 = sld [smem:[%s3456_s0 + %s2875_s22]]  }
  0x2c   :  { %3483 = sst [smem:[#allocation21_spill]] %s3021_s6 }
  0x2d   :  { %s3036_s30 = sld [smem:[%s3456_s0 + %s2876_s28]]  }
  0x2e   :  { %s3041_s6 = sld [smem:[%s3456_s0 + %s2877_s7]]  }
  0x2f   :  { %69 = vsyncpa [#allocation4], 0  ;;  %s85_s22 = sshll.u32 %s2911_s21, 4  ;;  %s86_s22 = int_to_ptr.vmem [resolvable:$true] %s85_s22 }
  0x30   :  { %70 = vsyncpa [#allocation6], 0  ;;  %s95_s23 = sshll.u32 %s2916_s25, 4  ;;  %s2820_s26 = scalar_lea.vmem %s86_s22, 16  ;;  %s96_s23 = int_to_ptr.vmem [resolvable:$true] %s95_s23 }
  0x31   :  { %p2821_p0 = scmp.ne.s32.totalorder %s86_s22, %s2820_s26  ;;  %p2825_p1 = scmp.lt.s32.totalorder %s86_s22, %s86_s22 }
  0x32   :  { %p2826_p2 = scmp.lt.s32.totalorder %s2820_s26, %s2820_s26 }
  0x34   :  { %p2827_p3 = por %p2826_p2, %p2825_p1 }
  0x36   :  { %p2828_p4 = pnand %p2827_p3, %p2821_p0 }
  0x38   :  { %2831 = shalt.err (!%p2828_p4)
}
  0x39   :  { %s2879_s28 = smov [#allocation3]   ;;  %s2832_s1 = scalar_lea.vmem %s96_s23, 16 }
  0x3a   :  { %88 = dma.vmem_to_smem %s86_s22, 16, %s2879_s28, [#allocation4]  }
  0x3b   :  { %p2833_p5 = scmp.ne.s32.totalorder %s96_s23, %s2832_s1  ;;  %p2837_p6 = scmp.lt.s32.totalorder %s96_s23, %s96_s23 }
  0x3c   :  { %p2838_p7 = scmp.lt.s32.totalorder %s2832_s1, %s2832_s1 }
  0x3e   :  { %p2839_p8 = por %p2838_p7, %p2837_p6 }
  0x40   :  { %p2840_p9 = pnand %p2839_p8, %p2833_p5 }
  0x42   :  { %2843 = shalt.err (!%p2840_p9)
}
  0x43   :  { %s2880_s0 = smov [#allocation5]  }
  0x44   :  { %98 = dma.vmem_to_smem %s96_s23, 16, %s2880_s0, [#allocation6]  }
  0x45   :  { %2844 = dma.done.wait [#allocation4], 16  }
  0x46   :  { %2845 = vsyncadd [#allocation4], 4294967280 }
  0x47   :  { %2846 = dma.done.wait [#allocation6], 16  }
  0x48   :  { %2847 = vsyncadd [#allocation6], 4294967280 }
  0x49   :  { %145 = sfence }
  0x4a   :  { %v147_v0 = vld [vmem:[%s2896_s9] sm:$0xff]  ;;  %v2881_v4 = vmov 0.0   ;;  %v2882_v5 = vmov 0   ;;  %v3054_v6 = vld [vmem:[%s2926_s3 + $0x10] sm:$0xff]  ;;  %v168_v7 = vld [vmem:[%s2926_s3 + $0x18] sm:$0xff]  ;;  %vm189_vm0 = vcmask 64512  }
  0x4b   :  { %v153_v1 = vld [vmem:[%s2891_s5] sm:$0xff]  ;;  %152 = vst [vmem:[#allocation2 + $0x8] sm:$0xf0] %v147_v0  ;;  %v149_v3 = vcombine.low %v147_v0, %v147_v0  ;;  %266 = vmatprep.mubr.f32.mxu0 %v2881_v4  ;;  %2799 = vset.pattern.permute.xlu1 %v2882_v5  ;;  %v3068_v13 = vld [vmem:[%s2946_s24 + $0x10] sm:$0xff]  ;;  %v1371_v14 = vld [vmem:[%s2926_s3 + $0x8] sm:$0xff]  ;;  %vm306_vm1 = vcmask 261120  }
  0x4c   :  { %v155_v2 = vcombine.high %v153_v1, %v153_v1  ;;  %157 = vst [vmem:[#allocation2] sm:$0xf] %v153_v1  ;;  %181 = vperm.xlu1 %2799, %v3054_v6   ;;  %2798 = vset.pattern.permute.xlu0 %v2882_v5  ;;  %v394_v8 = vld [vmem:[%s2946_s24] sm:$0xff]  ;;  %v3076_v16 = vld [vmem:[%s2921_s29 + $0x8] sm:$0xff]  ;;  %v3087_v19 = vld [vmem:[%s2921_s29 + $0x10] sm:$0xff]  ;;  %s3486_s21 = sld [smem:[#allocation10_spill]] }
  0x4d   :  { %151 = vst [vmem:[#allocation2] sm:$0xf0] %v149_v3  ;;  %374 = vmatprep.mubr.f32.mxu1 %v2881_v4  ;;  %v3061_v9 = vld [vmem:[%s2926_s3] sm:$0xff]  ;;  %v395_v18 = vld [vmem:[%s2946_s24 + $0x8] sm:$0xff]  ;;  %v3091_v20 = vld [vmem:[%s2966_s20 + $0x10] sm:$0xff]  ;;  %s3487_s25 = sld [smem:[#allocation9_spill]] }
  0x4e   :  { %158 = vst [vmem:[#allocation2 + $0x8] sm:$0xf] %v155_v2  ;;  %171 = vperm.xlu0 %2798, %v3061_v9   ;;  %v3065_v12 = vld [vmem:[%s2921_s29] sm:$0xff]  ;;  %v397_v21 = vld [vmem:[%s2946_s24 + $0x18] sm:$0xff]  ;;  %v632_v24 = vld [vmem:[%s2966_s20 + $0x8] sm:$0xff]  ;;  %s3489_s3 = sld [smem:[#allocation13_spill]] }
  0x4f   :  { %v300_v15 = vld [vmem:[%s2936_s14] sm:$0xf]  ;;  %v3098_v22 = vld [vmem:[%s2921_s29 + $0x18] sm:$0xff]  ;;  %v3112_v27 = vld [vmem:[%s2986_s12 + $0x8] sm:$0xff]  ;;  %s3488_s29 = sld [smem:[#allocation11_spill]]  ;;  %s3491_s24 = sld [smem:[#allocation15_spill]] }
  0x50   :  { %186 = vperm.xlu1 %2799, %v168_v7   ;;  %v3080_v17 = vld [vmem:[%s2966_s20] sm:$0xff]  ;;  %v634_v26 = vld [vmem:[%s2966_s20 + $0x18] sm:$0xff]  ;;  %v3116_v28 = vld [vmem:[%s2986_s12 + $0x10] sm:$0xff]  ;;  %vm1079_vm2 = vcmask 1043456   ;;  %s3493_s20 = sld [smem:[#allocation20_spill]]  ;;  %s3494_s2 = sld [smem:[#allocation17_spill]] }
  0x51   :  { %v765_v23 = vld [vmem:[%s2976_s4] sm:$0xf]  ;;  %v3120_v29 = vld [vmem:[%s2986_s12 + $0x18] sm:$0xff]  ;;  %v3128_v31 = vld [vmem:[%s3006_s17 + $0x8] sm:$0xff]  ;;  %s1099_s7 = sld [smem:[#allocation5]]  ;;  %s3496_s15 = sld [smem:[#allocation16_spill]] }
  0x52   :  { %176 = vperm.xlu0 %2798, %v1371_v14   ;;  %v3107_v25 = vld [vmem:[%s2986_s12] sm:$0xff]  ;;  %v3132_v32 = vld [vmem:[%s3006_s17 + $0x10] sm:$0xff]  ;;  %v3136_v33 = vld [vmem:[%s3006_s17 + $0x18] sm:$0xff]  ;;  %s3492_s12 = sld [smem:[#allocation12_spill]]  ;;  %s1101_s11 = sld [smem:[#allocation3]] }
  0x53   :  { %v3124_v30 = vld [vmem:[%s3006_s17] sm:$0xff]  ;;  %s3485_s17 = sld [smem:[#allocation21_spill]]  ;;  %s3497_s16 = sld [smem:[#allocation18_spill]] }
  0x54   :  { %v163_v11 = vld [vmem:[#allocation2] sm:$0xff]  ;;  %400 = vperm.xlu1 %2799, %v394_v8  }
  0x55   :  { %v164_v10 = vld [vmem:[#allocation2 + $0x8] sm:$0xff]  ;;  %v1504_v34 = vld [vmem:[%s2936_s14] sm:$0xf]  ;;  %s3490_s14 = sld [smem:[#allocation14_spill]] }
  0x56   :  { %202 = vmatprep.subr.mxu0 %v164_v10  ;;  %303 = vperm.xlu0 %2798, %v300_v15   ;;  %v299_v3 = vld [vmem:[%s2931_s8] sm:$0xf] }
  0x57   :  { %203 = vmatpush1.msra.mxu0 %v163_v11 }
  0x58   :  { %2617 = vmatmul.mubr.msk.f32.vlgmr.msra.gmra.mrb[0].mxu0 %vm189_vm0, %v3065_v12  ;;  %410 = vperm.xlu1 %2799, %v3068_v13  }
  0x59   :  { %272 = vmatprep.mubr.f32.mxu0 %v2881_v4 }
  0x5a   :  { %405 = vperm.xlu0 %2798, %v395_v18  }
  0x5c   :  { %2618 = vmatmul.mubr.msk.f32.gmra.mrb[2].mxu0 %vm189_vm0, %v3076_v16  ;;  %637 = vperm.xlu1 %2799, %v3080_v17  }
  0x5d   :  { %278 = vmatprep.mubr.f32.mxu0 %v2881_v4 }
  0x5e   :  { %415 = vperm.xlu0 %2798, %v397_v21  }
  0x60   :  { %2619 = vmatmul.mubr.msk.f32.gmra.mrb[4].mxu0 %vm189_vm0, %v3087_v19  ;;  %647 = vperm.xlu1 %2799, %v3091_v20  }
  0x61   :  { %284 = vmatprep.mubr.f32.mxu0 %v2881_v4 }
  0x62   :  { %642 = vperm.xlu0 %2798, %v632_v24  }
  0x64   :  { %2620 = vmatmul.mubr.msk.f32.gmra.mrb[6].mxu0 %vm189_vm0, %v3098_v22  ;;  %768 = vperm.xlu1 %2799, %v765_v23   ;;  %v3152_v23 = vld [vmem:[%s3486_s21] sm:$0xff] }
  0x65   :  { %601 = vmatprep.mubr.f32.mxu0 %v2881_v4 }
  0x66   :  { %652 = vperm.xlu0 %2798, %v634_v26  }
  0x68   :  { %864 = vperm.xlu1 %2799, %v3107_v25  }
  0x6c   :  { %869 = vperm.xlu1 %2799, %v3112_v27  }
  0x70   :  { %874 = vperm.xlu1 %2799, %v3116_v28  }
  0x74   :  { %879 = vperm.xlu1 %2799, %v3120_v29  }
  0x78   :  { %1137 = vperm.xlu1 %2799, %v3124_v30  }
  0x7c   :  { %1142 = vperm.xlu1 %2799, %v3128_v31  }
  0x80   :  { %1147 = vperm.xlu1 %2799, %v3132_v32  }
  0x84   :  { %1152 = vperm.xlu1 %2799, %v3136_v33  }
  0x88   :  { %1381 = vperm.xlu1 %2799, %v1371_v14   ;;  %v3145_v14 = vld [vmem:[%s2901_s13] sm:$0xff] }
  0x89   :  { %v621_v15 = vcombine.high %v3145_v14, %v3145_v14 }
  0x8c   :  { %1386 = vperm.xlu1 %2799, %v3054_v6  }
  0x90   :  { %1391 = vperm.xlu1 %2799, %v168_v7  }
  0x94   :  { %1507 = vperm.xlu1 %2799, %v1504_v34   ;;  %v3170_v34 = vld [vmem:[%s3486_s21 + $0x18] sm:$0xff] }
  0x98   :  { %1604 = vperm.xlu1 %2799, %v394_v8  }
  0x9c   :  { %1609 = vperm.xlu1 %2799, %v395_v18  }
  0xa0   :  { %1619 = vperm.xlu1 %2799, %v397_v21  }
  0xa4   :  { %1849 = vperm.xlu1 %2799, %v632_v24   ;;  %v3158_v24 = vld [vmem:[%s3486_s21 + $0x8] sm:$0xff] }
  0xa8   :  { %1859 = vperm.xlu1 %2799, %v634_v26   ;;  %v3164_v26 = vld [vmem:[%s3486_s21 + $0x10] sm:$0xff] }
  0xcb   :  { %v182_v44 = vpop.permute.xlu1 %181 }
  0xcd   :  { %v172_v35 = vpop.permute.xlu0 %171 }
  0xcf   :  { %v187_v55 = vpop.permute.xlu1 %186 }
  0xd1   :  { %v177_v39 = vpop.permute.xlu0 %176 }
  0xd5   :  { %v304_v5 = vpop.permute.xlu0 %303 }
 0x12b   :  { %v268_v36 = vpop.f32.mrb[0].mxu0 }
 0x12c   :  { %v270_v37 = vpop.f32.mrb[1].mxu0  ;;  %v269_v38 = vadd.f32 %v268_v36, %v172_v35 }
 0x12d   :  { %v271_v40 = vadd.f32 %v270_v37, %v172_v35  ;;  %v614_v35 = vld [vmem:[%s3487_s25] sm:$0xff] }
 0x12e   :  { %v291_v46 = vmax.f32 %v269_v38, 0.0  ;;  %v616_v36 = vcombine.low %v614_v35, %v614_v35 }
 0x12f   :  { %v274_v41 = vpop.f32.mrb[2].mxu0  ;;  %v292_v48 = vmax.f32 %v271_v40, 0.0 }
 0x130   :  { %v275_v42 = vadd.f32 %v274_v41, %v177_v39  ;;  %v276_v43 = vpop.f32.mrb[3].mxu0  ;;  %v406_v41 = vpop.permute.xlu0 %405 }
 0x131   :  { %v277_v45 = vadd.f32 %v276_v43, %v177_v39  ;;  %v401_v39 = vpop.permute.xlu1 %400 }
 0x132   :  { %v293_v47 = vmax.f32 %v275_v42, 0.0 }
 0x133   :  { %v294_v49 = vmax.f32 %v277_v45, 0.0  ;;  %v280_v50 = vpop.f32.mrb[4].mxu0 }
 0x134   :  { %v282_v51 = vpop.f32.mrb[5].mxu0  ;;  %v2681_v52 = vpack.c.bf16 %v293_v47, %v291_v46  ;;  %v281_v54 = vadd.f32 %v280_v50, %v182_v44 }
 0x135   :  { %v2679_v53 = vpack.c.bf16 %v294_v49, %v292_v48  ;;  %v283_v56 = vadd.f32 %v282_v51, %v182_v44 }
 0x136   :  { %v295_v61 = vmax.f32 %v281_v54, 0.0  ;;  %v411_v54 = vpop.permute.xlu1 %410 }
 0x137   :  { %v286_v57 = vpop.f32.mrb[6].mxu0  ;;  %2680 = vmatprep.subr.bf16.mxu1 %v2679_v53  ;;  %v296_v63 = vmax.f32 %v283_v56, 0.0 }
 0x138   :  { %v287_v58 = vadd.f32 %v286_v57, %v187_v55  ;;  %v288_v59 = vpop.f32.mrb[7].mxu0  ;;  %2682 = vmatpush1.bf16.msra.mxu1 %v2681_v52  ;;  %v416_v57 = vpop.permute.xlu0 %415 }
 0x139   :  { %v289_v60 = vadd.f32 %v288_v59, %v187_v55 }
 0x13a   :  { %v297_v62 = vmax.f32 %v287_v58, 0.0 }
 0x13b   :  { %v298_v0 = vmax.f32 %v289_v60, 0.0 }
 0x13c   :  { %v2685_v1 = vpack.c.bf16 %v297_v62, %v295_v61 }
 0x13d   :  { %v2683_v2 = vpack.c.bf16 %v298_v0, %v296_v63 }
 0x13f   :  { %2684 = vmatprep.subr.bf16.mxu1 %v2683_v2 }
 0x140   :  { %2686 = vmatpush1.bf16.msra.mxu1 %v2685_v1 }
 0x143   :  { %2621 = vmatmul.mubr.msk.f32.vlgmr.msra.gmra.mrb[0].mxu1 %vm306_vm1, %v299_v3 }
 0x144   :  { %494 = vmatprep.mubr.f32.mxu1 %v2881_v4 }
 0x216   :  { %v376_v6 = vpop.f32.mrb[0].mxu1 }
 0x217   :  { %v377_v7 = vadd.f32 %v376_v6, %v304_v5  ;;  %v378_v8 = vpop.f32.mrb[1].mxu1 }
 0x218   :  { %v379_v10 = vadd.f32 %v378_v8, %v304_v5 }
 0x219   :  { %386 = vst [vmem:[#allocation2] sm:$0xf] %v377_v7 }
 0x21a   :  { %v383_v11 = vcombine.low %v377_v7, %v379_v10  ;;  %387 = vst [vmem:[#allocation2 + $0x8] sm:$0xf] %v379_v10  ;;  %v527_v7 = vld [vmem:[%s3488_s29] sm:$0xf] }
 0x21b   :  { %v3180_v10 = vld [vmem:[%s3489_s3] sm:$0xff] }
 0x21c   :  { %385 = vst [vmem:[%s3485_s17] sm:$0xff] %v383_v11  ;;  %v3186_v11 = vld [vmem:[%s3489_s3 + $0x8] sm:$0xff] }
 0x220   :  { %v392_v18 = vld [vmem:[#allocation2] sm:$0xff] }
 0x221   :  { %623 = vst [vmem:[#allocation2] sm:$0xf] %v3145_v14  ;;  %v393_v21 = vld [vmem:[#allocation2 + $0x8] sm:$0xff]  ;;  %618 = vst [vmem:[#allocation2] sm:$0xf0] %v616_v36 }
 0x222   :  { %624 = vst [vmem:[#allocation2 + $0x8] sm:$0xf] %v621_v15  ;;  %430 = vmatprep.subr.mxu1 %v393_v21  ;;  %619 = vst [vmem:[#allocation2 + $0x8] sm:$0xf0] %v614_v35  ;;  %v3192_v15 = vld [vmem:[%s3489_s3 + $0x10] sm:$0xff] }
 0x223   :  { %431 = vmatpush1.msra.mxu1 %v392_v18  ;;  %v3198_v18 = vld [vmem:[%s3489_s3 + $0x18] sm:$0xff] }
 0x224   :  { %2622 = vmatmul.mubr.msk.f32.vlgmr.msra.gmra.mrb[2].mxu1 %vm189_vm0, %v3152_v23 }
 0x225   :  { %500 = vmatprep.mubr.f32.mxu1 %v2881_v4 }
 0x228   :  { %2623 = vmatmul.mubr.msk.f32.gmra.mrb[4].mxu1 %vm189_vm0, %v3158_v24  ;;  %v629_v8 = vld [vmem:[#allocation2] sm:$0xff] }
 0x229   :  { %506 = vmatprep.mubr.f32.mxu1 %v2881_v4  ;;  %v630_v6 = vld [vmem:[#allocation2 + $0x8] sm:$0xff] }
 0x22c   :  { %2624 = vmatmul.mubr.msk.f32.gmra.mrb[6].mxu1 %vm189_vm0, %v3164_v26 }
 0x22d   :  { %512 = vmatprep.mubr.f32.mxu1 %v2881_v4 }
 0x230   :  { %2625 = vmatmul.mubr.msk.f32.gmra.mrb[8].mxu1 %vm189_vm0, %v3170_v34 }
 0x231   :  { %838 = vmatprep.mubr.f32.mxu1 %v2881_v4 }
 0x2f7   :  { %v496_v37 = vpop.f32.mrb[2].mxu1 }
 0x2f8   :  { %v498_v38 = vpop.f32.mrb[3].mxu1  ;;  %v497_v40 = vadd.f32 %v496_v37, %v401_v39 }
 0x2f9   :  { %v499_v42 = vadd.f32 %v498_v38, %v401_v39  ;;  %v638_v38 = vpop.permute.xlu1 %637 }
 0x2fa   :  { %v519_v47 = vmax.f32 %v497_v40, 0.0  ;;  %v643_v40 = vpop.permute.xlu0 %642 }
 0x2fb   :  { %v502_v43 = vpop.f32.mrb[4].mxu1  ;;  %v520_v49 = vmax.f32 %v499_v42, 0.0 }
 0x2fc   :  { %v503_v44 = vadd.f32 %v502_v43, %v406_v41  ;;  %v504_v45 = vpop.f32.mrb[5].mxu1 }
 0x2fd   :  { %v505_v46 = vadd.f32 %v504_v45, %v406_v41 }
 0x2fe   :  { %v521_v48 = vmax.f32 %v503_v44, 0.0 }
 0x2ff   :  { %v522_v50 = vmax.f32 %v505_v46, 0.0  ;;  %v508_v51 = vpop.f32.mrb[6].mxu1 }
 0x300   :  { %v2689_v52 = vpack.c.bf16 %v521_v48, %v519_v47  ;;  %v510_v53 = vpop.f32.mrb[7].mxu1  ;;  %v509_v56 = vadd.f32 %v508_v51, %v411_v54 }
 0x301   :  { %v2687_v55 = vpack.c.bf16 %v522_v50, %v520_v49  ;;  %v511_v58 = vadd.f32 %v510_v53, %v411_v54  ;;  %v648_v53 = vpop.permute.xlu1 %647 }
 0x302   :  { %v523_v63 = vmax.f32 %v509_v56, 0.0  ;;  %v653_v56 = vpop.permute.xlu0 %652 }
 0x303   :  { %v514_v59 = vpop.f32.mrb[8].mxu1  ;;  %2688 = vmatprep.subr.bf16.mxu0 %v2687_v55  ;;  %v524_v1 = vmax.f32 %v511_v58, 0.0 }
 0x304   :  { %v515_v60 = vadd.f32 %v514_v59, %v416_v57  ;;  %v516_v61 = vpop.f32.mrb[9].mxu1  ;;  %2690 = vmatpush1.bf16.msra.mxu0 %v2689_v52 }
 0x305   :  { %v517_v62 = vadd.f32 %v516_v61, %v416_v57 }
 0x306   :  { %v525_v0 = vmax.f32 %v515_v60, 0.0 }
 0x307   :  { %v526_v2 = vmax.f32 %v517_v62, 0.0 }
 0x308   :  { %v2693_v3 = vpack.c.bf16 %v525_v0, %v523_v63 }
 0x309   :  { %v2691_v5 = vpack.c.bf16 %v526_v2, %v524_v1 }
 0x30b   :  { %2692 = vmatprep.subr.bf16.mxu0 %v2691_v5  ;;  %v764_v5 = vld [vmem:[%s3490_s14] sm:$0xf] }
 0x30c   :  { %2694 = vmatpush1.bf16.msra.mxu0 %v2693_v3 }
 0x30d   :  { %667 = vmatprep.subr.mxu0 %v630_v6  ;;  %v769_v6 = vpop.permute.xlu1 %768 }
 0x30f   :  { %2626 = vmatmul.mubr.msk.f32.vlgmr.msra.gmra.mrb[8].mxu0 %vm306_vm1, %v527_v7 }
 0x310   :  { %668 = vmatpush1.msra.mxu0 %v629_v8  ;;  %731 = vmatprep.mubr.f32.mxu0 %v2881_v4 }
 0x313   :  { %2627 = vmatmul.mubr.msk.f32.vlgmr.msra.gmra.mrb[10].mxu0 %vm189_vm0, %v3180_v10 }
 0x314   :  { %737 = vmatprep.mubr.f32.mxu0 %v2881_v4 }
 0x317   :  { %2628 = vmatmul.mubr.msk.f32.gmra.mrb[12].mxu0 %vm189_vm0, %v3186_v11 }
 0x318   :  { %743 = vmatprep.mubr.f32.mxu0 %v2881_v4 }
 0x31b   :  { %2629 = vmatmul.mubr.msk.f32.gmra.mrb[14].mxu0 %vm189_vm0, %v3192_v15 }
 0x31c   :  { %749 = vmatprep.mubr.f32.mxu0 %v2881_v4 }
 0x31f   :  { %2630 = vmatmul.mubr.msk.f32.gmra.mrb[16].mxu0 %vm189_vm0, %v3198_v18 }
 0x320   :  { %1065 = vmatprep.mubr.f32.mxu0 %v2881_v4 }
 0x3e2   :  { %v3203_v21 = vpop.f32.mrb[8].mxu0 }
 0x3e3   :  { %v3205_v35 = vpop.f32.mrb[9].mxu0 }
 0x3e6   :  { %v733_v36 = vpop.f32.mrb[10].mxu0 }
 0x3e7   :  { %v735_v37 = vpop.f32.mrb[11].mxu0  ;;  %v734_v39 = vadd.f32 %v733_v36, %v638_v38 }
 0x3e8   :  { %v736_v41 = vadd.f32 %v735_v37, %v638_v38 }
 0x3e9   :  { %v756_v46 = vmax.f32 %v734_v39, 0.0 }
 0x3ea   :  { %v739_v42 = vpop.f32.mrb[12].mxu0  ;;  %v757_v48 = vmax.f32 %v736_v41, 0.0 }
 0x3eb   :  { %v740_v43 = vadd.f32 %v739_v42, %v643_v40  ;;  %v741_v44 = vpop.f32.mrb[13].mxu0 }
 0x3ec   :  { %v742_v45 = vadd.f32 %v741_v44, %v643_v40 }
 0x3ed   :  { %v758_v47 = vmax.f32 %v740_v43, 0.0 }
 0x3ee   :  { %v759_v49 = vmax.f32 %v742_v45, 0.0  ;;  %v745_v50 = vpop.f32.mrb[14].mxu0  ;;  %v3226_v45 = vld [vmem:[%s3491_s24] sm:$0xff] }
 0x3ef   :  { %v2697_v51 = vpack.c.bf16 %v758_v47, %v756_v46  ;;  %v747_v52 = vpop.f32.mrb[15].mxu0  ;;  %v746_v55 = vadd.f32 %v745_v50, %v648_v53  ;;  %v3232_v47 = vld [vmem:[%s3491_s24 + $0x8] sm:$0xff]  ;;  %v1972_v50 = vld [vmem:[%s2976_s4] sm:$0xf]  ;;  %s3495_s4 = sld [smem:[#allocation22_spill]] }
 0x3f0   :  { %v2695_v54 = vpack.c.bf16 %v759_v49, %v757_v48  ;;  %v748_v57 = vadd.f32 %v747_v52, %v648_v53  ;;  %v3238_v48 = vld [vmem:[%s3491_s24 + $0x10] sm:$0xff]  ;;  %v3244_v49 = vld [vmem:[%s3491_s24 + $0x18] sm:$0xff] }
 0x3f1   :  { %v760_v62 = vmax.f32 %v746_v55, 0.0 }
 0x3f2   :  { %v751_v58 = vpop.f32.mrb[16].mxu0  ;;  %2696 = vmatprep.subr.bf16.mxu1 %v2695_v54  ;;  %v761_v0 = vmax.f32 %v748_v57, 0.0 }
 0x3f3   :  { %v752_v59 = vadd.f32 %v751_v58, %v653_v56  ;;  %v753_v60 = vpop.f32.mrb[17].mxu0  ;;  %2698 = vmatpush1.bf16.msra.mxu1 %v2697_v51 }
 0x3f4   :  { %v754_v61 = vadd.f32 %v753_v60, %v653_v56 }
 0x3f5   :  { %v762_v63 = vmax.f32 %v752_v59, 0.0 }
 0x3f6   :  { %v763_v1 = vmax.f32 %v754_v61, 0.0 }
 0x3f7   :  { %v2701_v2 = vpack.c.bf16 %v762_v63, %v760_v62  ;;  %v1100_v63 = vstv %s1099_s7 }
 0x3f8   :  { %v2699_v3 = vpack.c.bf16 %v763_v1, %v761_v0  ;;  %2808 = vrsqrt.f32 %v1100_v63  ;;  %vm1105_vm3 = vcmp.eq.f32.partialorder %v1100_v63, inf  ;;  %vm1107_vm4 = vcmp.eq.f32.partialorder %v1100_v63, 0.0 }
 0x3fa   :  { %2700 = vmatprep.subr.bf16.mxu1 %v2699_v3 }
 0x3fb   :  { %2702 = vmatpush1.bf16.msra.mxu1 %v2701_v2 }
 0x3fe   :  { %2631 = vmatmul.mubr.msk.f32.vlgmr.msra.gmra.mrb[10].mxu1 %vm306_vm1, %v764_v5 }
 0x3ff   :  { %958 = vmatprep.mubr.f32.mxu1 %v2881_v4 }
 0x4d1   :  { %v840_v7 = vpop.f32.mrb[10].mxu1 }
 0x4d2   :  { %v3210_v8 = vadd.f32 %v840_v7, %v769_v6  ;;  %v842_v36 = vpop.f32.mrb[11].mxu1 }
 0x4d3   :  { %v3212_v37 = vadd.f32 %v842_v36, %v769_v6 }
 0x4d4   :  { %850 = vst [vmem:[#allocation2] sm:$0xf] %v3210_v8  ;;  %v1077_v38 = vmul.f32 %v3210_v8, %v3210_v8 }
 0x4d5   :  { %v847_v39 = vcombine.low %v3210_v8, %v3212_v37  ;;  %851 = vst [vmem:[#allocation2 + $0x8] sm:$0xf] %v3212_v37  ;;  %v1078_v40 = vmul.f32 %v3212_v37, %v3212_v37 }
 0x4d6   :  { %v1080_v41 = vsel %vm1079_vm2, %v1077_v38, 0.0  ;;  %v2809_v38 = vpop.eup %2808 }
 0x4d7   :  { %849 = vst [vmem:[%s3031_s27] sm:$0xff] %v847_v39  ;;  %v1081_v42 = vsel %vm1079_vm2, %v1078_v40, 0.0  ;;  %v865_v39 = vpop.permute.xlu1 %864  ;;  %v1102_v40 = vstv %s1101_s11 }
 0x4d8   :  { %v1082_v43 = vadd.f32 %v1081_v42, %v1080_v41  ;;  %v1104_v41 = vmul.f32 %v2809_v38, %v1100_v63  ;;  %v1108_v42 = vand.u32 2147483648, %v1100_v63 }
 0x4da   :  { %1083 = vadd.xlane.f32.xlu0 %v1082_v43 }
 0x4db   :  { %v856_v46 = vld [vmem:[#allocation2] sm:$0xff]  ;;  %v870_v43 = vpop.permute.xlu1 %869 }
 0x4dc   :  { %v857_v44 = vld [vmem:[#allocation2 + $0x8] sm:$0xff] }
 0x4dd   :  { %894 = vmatprep.subr.mxu1 %v857_v44  ;;  %v1106_v44 = vsel %vm1105_vm3, %v1100_v63, %v1104_v41 }
 0x4de   :  { %895 = vmatpush1.msra.mxu1 %v856_v46 }
 0x4df   :  { %2632 = vmatmul.mubr.msk.f32.vlgmr.msra.gmra.mrb[12].mxu1 %vm189_vm0, %v3226_v45 }
 0x4e0   :  { %964 = vmatprep.mubr.f32.mxu1 %v2881_v4 }
 0x4e3   :  { %2633 = vmatmul.mubr.msk.f32.gmra.mrb[14].mxu1 %vm189_vm0, %v3232_v47 }
 0x4e4   :  { %970 = vmatprep.mubr.f32.mxu1 %v2881_v4 }
 0x4e7   :  { %2634 = vmatmul.mubr.msk.f32.gmra.mrb[16].mxu1 %vm189_vm0, %v3238_v48 }
 0x4e8   :  { %976 = vmatprep.mubr.f32.mxu1 %v2881_v4 }
 0x4eb   :  { %2635 = vmatmul.mubr.msk.f32.gmra.mrb[18].mxu1 %vm189_vm0, %v3244_v49 }
 0x4ec   :  { %1338 = vmatprep.mubr.f32.mxu1 %v2881_v4 }
 0x4f0   :  { %1376 = vperm.xlu0 %2798, %v3061_v9   ;;  %v528_v9 = vld [vmem:[%s3492_s12] sm:$0xf] }
 0x4f4   :  { %1614 = vperm.xlu0 %2798, %v3068_v13   ;;  %v1265_v13 = vld [vmem:[%s3493_s20] sm:$0xf] }
 0x4f8   :  { %1844 = vperm.xlu0 %2798, %v3080_v17   ;;  %v1732_v17 = vld [vmem:[%s3492_s12] sm:$0xf] }
 0x4fc   :  { %1854 = vperm.xlu0 %2798, %v3091_v20   ;;  %v2200_v20 = vld [vmem:[%s3494_s2] sm:$0xf] }
 0x500   :  { %1975 = vperm.xlu0 %2798, %v1972_v50   ;;  %v1109_v50 = vsel %vm1107_vm4, %v1108_v42, %v1106_v44 }
 0x504   :  { %2072 = vperm.xlu0 %2798, %v3107_v25   ;;  %v2474_v25 = vld [vmem:[%s3493_s20] sm:$0xf] }
 0x508   :  { %2077 = vperm.xlu0 %2798, %v3112_v27  }
 0x50c   :  { %2082 = vperm.xlu0 %2798, %v3116_v28  }
 0x510   :  { %2087 = vperm.xlu0 %2798, %v3120_v29  }
 0x514   :  { %2346 = vperm.xlu0 %2798, %v3124_v30  }
 0x518   :  { %2351 = vperm.xlu0 %2798, %v3128_v31  }
 0x51c   :  { %2356 = vperm.xlu0 %2798, %v3132_v32  }
 0x520   :  { %2361 = vperm.xlu0 %2798, %v3136_v33  }
 0x524   :  { %531 = vperm.xlu0 %2798, %v528_v9  }
 0x528   :  { %1268 = vperm.xlu0 %2798, %v1265_v13  }
 0x52c   :  { %1735 = vperm.xlu0 %2798, %v1732_v17  }
 0x530   :  { %2203 = vperm.xlu0 %2798, %v2200_v20  }
 0x534   :  { %2477 = vperm.xlu0 %2798, %v2474_v25  }
 0x567   :  { %v1084_v27 = vpop.xlane.xlu0 %1083 }
 0x568   :  { %v1085_v28 = vrot.slane %v1084_v27, 4 }
 0x56a   :  { %v1086_v29 = vadd.f32 %v1085_v28, %v1084_v27 }
 0x56c   :  { %v1087_v30 = vrot.slane %v1086_v29, 2 }
 0x56e   :  { %v1088_v51 = vadd.f32 %v1087_v30, %v1086_v29  ;;  %v875_v29 = vpop.permute.xlu1 %874 }
 0x56f   :  { %v3267_v31 = vpop.permute.xlu0 %1376 }
 0x570   :  { %v1089_v32 = vrot.slane %v1088_v51, 1 }
 0x572   :  { %v1090_v52 = vadd.f32 %v1089_v32, %v1088_v51 }
 0x573   :  { %v3269_v33 = vpop.permute.xlu0 %1614 }
 0x574   :  { %2759 = vpush %v1090_v52 }
 0x577   :  { %v3271_v53 = vpop.permute.xlu0 %1844 }
 0x57b   :  { %v3273_v54 = vpop.permute.xlu0 %1854 }
 0x57f   :  { %v3275_v55 = vpop.permute.xlu0 %1975 }
 0x583   :  { %v3277_v56 = vpop.permute.xlu0 %2072 }
 0x587   :  { %v3279_v57 = vpop.permute.xlu0 %2077 }
 0x58b   :  { %v3281_v58 = vpop.permute.xlu0 %2082 }
 0x58f   :  { %v3283_v59 = vpop.permute.xlu0 %2087 }
 0x593   :  { %v3285_v60 = vpop.permute.xlu0 %2346 }
 0x597   :  { %v3287_v61 = vpop.permute.xlu0 %2351 }
 0x59b   :  { %v3289_v62 = vpop.permute.xlu0 %2356 }
 0x59f   :  { %v3291_v0 = vpop.permute.xlu0 %2361 }
 0x5a3   :  { %v532_v1 = vpop.permute.xlu0 %531 }
 0x5a4   :  { %v604_v2 = vadd.f32 %v3203_v21, %v532_v1  ;;  %v606_v3 = vadd.f32 %v3205_v35, %v532_v1 }
 0x5a5   :  { %s2760_s10 = spop %2759 }
 0x5a6   :  { %v610_v5 = vcombine.low %v604_v2, %v606_v3  ;;  %v1092_v6 = vstv %s2760_s10 }
 0x5a7   :  { %v1094_v7 = vmul.f32 0.0009765625, %v1092_v6 }
 0x5a8   :  { %612 = vst [vmem:[%s3495_s4] sm:$0xff] %v610_v5 }
 0x5a9   :  { %v1095_v36 = vadd.f32 1e-12, %v1094_v7 }
 0x5ab   :  { %2810 = vrsqrt.f32 %v1095_v36 }
 0x5ac   :  { %2812 = vrsqrt.f32 %v1102_v40 }
 0x5b2   :  { %v960_v21 = vpop.f32.mrb[12].mxu1 }
 0x5b3   :  { %v962_v35 = vpop.f32.mrb[13].mxu1  ;;  %v961_v9 = vadd.f32 %v960_v21, %v865_v39 }
 0x5b4   :  { %v963_v20 = vadd.f32 %v962_v35, %v865_v39  ;;  %v880_v39 = vpop.permute.xlu1 %879 }
 0x5b5   :  { %v2811_v46 = vpop.eup %2810  ;;  %v983_v52 = vmax.f32 %v961_v9, 0.0 }
 0x5b6   :  { %v1097_v13 = vmul.f32 %v2811_v46, %v3210_v8  ;;  %v1098_v17 = vmul.f32 %v2811_v46, %v3212_v37  ;;  %v966_v25 = vpop.f32.mrb[14].mxu1  ;;  %v984_v2 = vmax.f32 %v963_v20, 0.0  ;;  %v2813_v6 = vpop.eup %2812  ;;  %v2643_v20 = vld [vmem:[%s2891_s5 + $0x8] sm:$0xff]  ;;  %s3498_s5 = sld [smem:[#allocation19_spill]] }
 0x5b7   :  { %v967_v27 = vadd.f32 %v966_v25, %v870_v43  ;;  %v968_v28 = vpop.f32.mrb[15].mxu1 }
 0x5b8   :  { %v1110_v30 = vmul.f32 %v1109_v50, %v1097_v13  ;;  %v1111_v51 = vmul.f32 %v1109_v50, %v1098_v17  ;;  %v969_v32 = vadd.f32 %v968_v28, %v870_v43  ;;  %v1360_v28 = vcombine.high %v2643_v20, %v2643_v20 }
 0x5b9   :  { %v985_v1 = vmax.f32 %v967_v27, 0.0 }
 0x5ba   :  { %v1114_v63 = vcombine.low %v1110_v30, %v1111_v51  ;;  %v986_v3 = vmax.f32 %v969_v32, 0.0  ;;  %v972_v5 = vpop.f32.mrb[16].mxu1  ;;  %v3306_v32 = vld [vmem:[%s3497_s16] sm:$0xff] }
 0x5bb   :  { %v2705_v7 = vpack.c.bf16 %v985_v1, %v983_v52  ;;  %v974_v8 = vpop.f32.mrb[17].mxu1  ;;  %v973_v38 = vadd.f32 %v972_v5, %v875_v29  ;;  %v3312_v52 = vld [vmem:[%s3497_s16 + $0x8] sm:$0xff]  ;;  %v3318_v1 = vld [vmem:[%s3497_s16 + $0x10] sm:$0xff] }
 0x5bc   :  { %v1116_v37 = vsub.f32 %v3145_v14, %v1114_v63  ;;  %v2703_v36 = vpack.c.bf16 %v986_v3, %v984_v2  ;;  %v975_v41 = vadd.f32 %v974_v8, %v875_v29  ;;  %v2642_v14 = vld [vmem:[%s2896_s9 + $0x8] sm:$0xff]  ;;  %v991_v29 = vld [vmem:[%s3496_s15] sm:$0xf]  ;;  %v3324_v63 = vld [vmem:[%s3497_s16 + $0x18] sm:$0xff]  ;;  %v1138_v2 = vpop.permute.xlu1 %1137  ;;  %s2670_s9 = sld [smem:[#allocation5 + $0x1]] }
 0x5bd   :  { %v987_v46 = vmax.f32 %v973_v38, 0.0  ;;  %v1353_v27 = vcombine.low %v2642_v14, %v2642_v14 }
 0x5be   :  { %v1118_v40 = vmul.f32 %v2813_v6, %v1116_v37  ;;  %v978_v42 = vpop.f32.mrb[18].mxu1  ;;  %2704 = vmatprep.subr.bf16.mxu0 %v2703_v36  ;;  %v988_v9 = vmax.f32 %v975_v41, 0.0 }
 0x5bf   :  { %v979_v43 = vadd.f32 %v978_v42, %v880_v39  ;;  %v980_v44 = vpop.f32.mrb[19].mxu1  ;;  %2706 = vmatpush1.bf16.msra.mxu0 %v2705_v7 }
 0x5c0   :  { %1119 = vst [vmem:[%s3041_s6] sm:$0xff] %v1118_v40  ;;  %v1121_v21 = vcombine.high %v1118_v40, %v1118_v40  ;;  %1123 = vst [vmem:[#allocation2] sm:$0xf] %v1118_v40  ;;  %v981_v35 = vadd.f32 %v980_v44, %v880_v39  ;;  %v1143_v6 = vpop.permute.xlu1 %1142 }
 0x5c1   :  { %v989_v50 = vmax.f32 %v979_v43, 0.0 }
 0x5c2   :  { %1124 = vst [vmem:[#allocation2 + $0x8] sm:$0xf] %v1121_v21  ;;  %v990_v13 = vmax.f32 %v981_v35, 0.0 }
 0x5c3   :  { %v2709_v17 = vpack.c.bf16 %v989_v50, %v987_v46 }
 0x5c4   :  { %v2707_v25 = vpack.c.bf16 %v990_v13, %v988_v9  ;;  %v1148_v41 = vpop.permute.xlu1 %1147 }
 0x5c6   :  { %2708 = vmatprep.subr.bf16.mxu0 %v2707_v25 }
 0x5c7   :  { %2710 = vmatpush1.bf16.msra.mxu0 %v2709_v17  ;;  %v1129_v30 = vld [vmem:[#allocation2] sm:$0xff] }
 0x5c8   :  { %1355 = vst [vmem:[#allocation2] sm:$0xf0] %v1353_v27  ;;  %1362 = vst [vmem:[#allocation2] sm:$0xf] %v2643_v20  ;;  %v1153_v17 = vpop.permute.xlu1 %1152 }
 0x5c9   :  { %v1130_v51 = vld [vmem:[#allocation2 + $0x8] sm:$0xff] }
 0x5ca   :  { %2636 = vmatmul.mubr.msk.f32.vlgmr.msra.gmra.mrb[18].mxu0 %vm306_vm1, %v991_v29  ;;  %1167 = vmatprep.subr.mxu0 %v1130_v51  ;;  %1356 = vst [vmem:[#allocation2 + $0x8] sm:$0xf0] %v2642_v14  ;;  %1363 = vst [vmem:[#allocation2 + $0x8] sm:$0xf] %v1360_v28 }
 0x5cb   :  { %1168 = vmatpush1.msra.mxu0 %v1129_v30  ;;  %1231 = vmatprep.mubr.f32.mxu0 %v2881_v4 }
 0x5ce   :  { %2637 = vmatmul.mubr.msk.f32.vlgmr.msra.gmra.mrb[20].mxu0 %vm189_vm0, %v3306_v32 }
 0x5cf   :  { %1237 = vmatprep.mubr.f32.mxu0 %v2881_v4 }
 0x5d2   :  { %2638 = vmatmul.mubr.msk.f32.gmra.mrb[22].mxu0 %vm189_vm0, %v3312_v52 }
 0x5d3   :  { %1243 = vmatprep.mubr.f32.mxu0 %v2881_v4 }
 0x5d6   :  { %2639 = vmatmul.mubr.msk.f32.gmra.mrb[24].mxu0 %vm189_vm0, %v3318_v1 }
 0x5d7   :  { %1249 = vmatprep.mubr.f32.mxu0 %v2881_v4 }
 0x5da   :  { %2640 = vmatmul.mubr.msk.f32.gmra.mrb[26].mxu0 %vm189_vm0, %v3324_v63 }
 0x5db   :  { %1577 = vmatprep.mubr.f32.mxu0 %v2881_v4 }
 0x69d   :  { %v3329_v3 = vpop.f32.mrb[18].mxu0 }
 0x69e   :  { %v3331_v5 = vpop.f32.mrb[19].mxu0 }
 0x6a1   :  { %v1233_v7 = vpop.f32.mrb[20].mxu0 }
 0x6a2   :  { %v1235_v8 = vpop.f32.mrb[21].mxu0  ;;  %v1234_v37 = vadd.f32 %v1233_v7, %v1138_v2 }
 0x6a3   :  { %v1236_v36 = vadd.f32 %v1235_v8, %v1138_v2 }
 0x6a4   :  { %v1256_v43 = vmax.f32 %v1234_v37, 0.0  ;;  %v1369_v37 = vld [vmem:[#allocation2 + $0x8] sm:$0xff] }
 0x6a5   :  { %v1239_v38 = vpop.f32.mrb[22].mxu0  ;;  %v1257_v21 = vmax.f32 %v1236_v36, 0.0  ;;  %v1264_v36 = vld [vmem:[%s3498_s5] sm:$0xf] }
 0x6a6   :  { %v1240_v39 = vadd.f32 %v1239_v38, %v1143_v6  ;;  %v1241_v40 = vpop.f32.mrb[23].mxu0  ;;  %v1368_v38 = vld [vmem:[#allocation2] sm:$0xff] }
 0x6a7   :  { %v1242_v42 = vadd.f32 %v1241_v40, %v1143_v6 }
 0x6a8   :  { %v1258_v44 = vmax.f32 %v1240_v39, 0.0  ;;  %v1269_v39 = vpop.permute.xlu0 %1268 }
 0x6a9   :  { %v1259_v35 = vmax.f32 %v1242_v42, 0.0  ;;  %v1245_v46 = vpop.f32.mrb[24].mxu0 }
 0x6aa   :  { %v2713_v50 = vpack.c.bf16 %v1258_v44, %v1256_v43  ;;  %v1247_v14 = vpop.f32.mrb[25].mxu0  ;;  %v1246_v13 = vadd.f32 %v1245_v46, %v1148_v41  ;;  %v1382_v43 = vpop.permute.xlu1 %1381 }
 0x6ab   :  { %v2711_v9 = vpack.c.bf16 %v1259_v35, %v1257_v21  ;;  %v1248_v20 = vadd.f32 %v1247_v14, %v1148_v41 }
 0x6ac   :  { %v1260_v30 = vmax.f32 %v1246_v13, 0.0 }
 0x6ad   :  { %v1251_v25 = vpop.f32.mrb[26].mxu0  ;;  %2712 = vmatprep.subr.bf16.mxu1 %v2711_v9  ;;  %v1261_v2 = vmax.f32 %v1248_v20, 0.0 }
 0x6ae   :  { %v1252_v27 = vadd.f32 %v1251_v25, %v1153_v17  ;;  %v1253_v28 = vpop.f32.mrb[27].mxu0  ;;  %2714 = vmatpush1.bf16.msra.mxu1 %v2713_v50 }
 0x6af   :  { %v1254_v29 = vadd.f32 %v1253_v28, %v1153_v17 }
 0x6b0   :  { %v1262_v51 = vmax.f32 %v1252_v27, 0.0 }
 0x6b1   :  { %v1263_v6 = vmax.f32 %v1254_v29, 0.0 }
 0x6b2   :  { %v2717_v7 = vpack.c.bf16 %v1262_v51, %v1260_v30 }
 0x6b3   :  { %v2715_v8 = vpack.c.bf16 %v1263_v6, %v1261_v2 }
 0x6b5   :  { %2716 = vmatprep.subr.bf16.mxu1 %v2715_v8 }
 0x6b6   :  { %2718 = vmatpush1.bf16.msra.mxu1 %v2717_v7 }
 0x6b7   :  { %1406 = vmatprep.subr.mxu1 %v1369_v37 }
 0x6b9   :  { %2641 = vmatmul.mubr.msk.f32.vlgmr.msra.gmra.mrb[20].mxu1 %vm306_vm1, %v1264_v36 }
 0x6ba   :  { %1407 = vmatpush1.msra.mxu1 %v1368_v38  ;;  %1470 = vmatprep.mubr.f32.mxu1 %v2881_v4 }
 0x6bd   :  { %2644 = vmatmul.mubr.msk.f32.vlgmr.msra.gmra.mrb[22].mxu1 %vm189_vm0, %v3065_v12 }
 0x6be   :  { %1476 = vmatprep.mubr.f32.mxu1 %v2881_v4 }
 0x6c1   :  { %2645 = vmatmul.mubr.msk.f32.gmra.mrb[24].mxu1 %vm189_vm0, %v3076_v16 }
 0x6c2   :  { %1482 = vmatprep.mubr.f32.mxu1 %v2881_v4 }
 0x6c5   :  { %2646 = vmatmul.mubr.msk.f32.gmra.mrb[26].mxu1 %vm189_vm0, %v3087_v19 }
 0x6c6   :  { %1488 = vmatprep.mubr.f32.mxu1 %v2881_v4 }
 0x6c9   :  { %2647 = vmatmul.mubr.msk.f32.gmra.mrb[28].mxu1 %vm189_vm0, %v3098_v22  ;;  %v1387_v22 = vpop.permute.xlu1 %1386 }
 0x6ca   :  { %1805 = vmatprep.mubr.f32.mxu1 %v2881_v4 }
 0x6cd   :  { %v1392_v2 = vpop.permute.xlu1 %1391 }
 0x78c   :  { %v1340_v12 = vpop.f32.mrb[20].mxu1 }
 0x78d   :  { %v1341_v40 = vadd.f32 %v1340_v12, %v1269_v39  ;;  %v1342_v41 = vpop.f32.mrb[21].mxu1 }
 0x78e   :  { %v1343_v42 = vadd.f32 %v1342_v41, %v1269_v39 }
 0x790   :  { %v1347_v44 = vcombine.low %v1341_v40, %v1343_v42  ;;  %v1472_v16 = vpop.f32.mrb[22].mxu1  ;;  %v1503_v42 = vld [vmem:[%s2931_s8] sm:$0xf]  ;;  %s2671_s8 = sld [smem:[#allocation3 + $0x1]] }
 0x791   :  { %v1474_v21 = vpop.f32.mrb[23].mxu1  ;;  %v1473_v35 = vadd.f32 %v1472_v16, %v3267_v31 }
 0x792   :  { %1349 = vst [vmem:[%s3046_s19] sm:$0xff] %v1347_v44  ;;  %v1475_v19 = vadd.f32 %v1474_v21, %v3267_v31 }
 0x793   :  { %v1495_v13 = vmax.f32 %v1473_v35, 0.0 }
 0x794   :  { %v1478_v46 = vpop.f32.mrb[24].mxu1  ;;  %v1496_v20 = vmax.f32 %v1475_v19, 0.0 }
 0x795   :  { %v1479_v50 = vadd.f32 %v1478_v46, %v1382_v43  ;;  %v1480_v14 = vpop.f32.mrb[25].mxu1  ;;  %v2657_v46 = vld [vmem:[%s3487_s25 + $0x8] sm:$0xff] }
 0x796   :  { %v1481_v9 = vadd.f32 %v1480_v14, %v1382_v43  ;;  %v1508_v43 = vpop.permute.xlu1 %1507  ;;  %v1823_v14 = vcombine.low %v2657_v46, %v2657_v46 }
 0x797   :  { %v1497_v17 = vmax.f32 %v1479_v50, 0.0  ;;  %v3356_v50 = vld [vmem:[%s2901_s13 + $0x8] sm:$0xff] }
 0x798   :  { %v1498_v25 = vmax.f32 %v1481_v9, 0.0  ;;  %v1484_v27 = vpop.f32.mrb[26].mxu1 }
 0x799   :  { %v2721_v28 = vpack.c.bf16 %v1497_v17, %v1495_v13  ;;  %v1486_v29 = vpop.f32.mrb[27].mxu1  ;;  %v1485_v51 = vadd.f32 %v1484_v27, %v1387_v22 }
 0x79a   :  { %v2719_v30 = vpack.c.bf16 %v1498_v25, %v1496_v20  ;;  %v1487_v6 = vadd.f32 %v1486_v29, %v1387_v22  ;;  %v1828_v22 = vcombine.high %v3356_v50, %v3356_v50  ;;  %v1605_v17 = vpop.permute.xlu1 %1604 }
 0x79b   :  { %v1499_v36 = vmax.f32 %v1485_v51, 0.0 }
 0x79c   :  { %v1490_v7 = vpop.f32.mrb[28].mxu1  ;;  %2720 = vmatprep.subr.bf16.mxu0 %v2719_v30  ;;  %v1500_v39 = vmax.f32 %v1487_v6, 0.0 }
 0x79d   :  { %v1491_v31 = vadd.f32 %v1490_v7, %v1392_v2  ;;  %v1492_v8 = vpop.f32.mrb[29].mxu1  ;;  %2722 = vmatpush1.bf16.msra.mxu0 %v2721_v28 }
 0x79e   :  { %v1493_v37 = vadd.f32 %v1492_v8, %v1392_v2  ;;  %v1610_v27 = vpop.permute.xlu1 %1609 }
 0x79f   :  { %v1501_v38 = vmax.f32 %v1491_v31, 0.0 }
 0x7a0   :  { %v1502_v12 = vmax.f32 %v1493_v37, 0.0 }
 0x7a1   :  { %v2725_v40 = vpack.c.bf16 %v1501_v38, %v1499_v36 }
 0x7a2   :  { %v2723_v41 = vpack.c.bf16 %v1502_v12, %v1500_v39  ;;  %v1620_v38 = vpop.permute.xlu1 %1619 }
 0x7a4   :  { %2724 = vmatprep.subr.bf16.mxu0 %v2723_v41 }
 0x7a5   :  { %2726 = vmatpush1.bf16.msra.mxu0 %v2725_v40 }
 0x7a8   :  { %2648 = vmatmul.mubr.msk.f32.vlgmr.msra.gmra.mrb[28].mxu0 %vm306_vm1, %v1503_v42 }
 0x7a9   :  { %1698 = vmatprep.mubr.f32.mxu0 %v2881_v4 }
 0x87b   :  { %v1579_v44 = vpop.f32.mrb[28].mxu0 }
 0x87c   :  { %v1580_v16 = vadd.f32 %v1579_v44, %v1508_v43  ;;  %v1581_v21 = vpop.f32.mrb[29].mxu0 }
 0x87d   :  { %v1582_v35 = vadd.f32 %v1581_v21, %v1508_v43 }
 0x87e   :  { %1590 = vst [vmem:[#allocation2] sm:$0xf] %v1580_v16 }
 0x87f   :  { %v1586_v19 = vcombine.low %v1580_v16, %v1582_v35  ;;  %1591 = vst [vmem:[#allocation2 + $0x8] sm:$0xf] %v1582_v35 }
 0x881   :  { %2649 = vst [vmem:[%s3485_s17 + $0x8] sm:$0xff] %v1586_v19 }
 0x885   :  { %v1596_v9 = vld [vmem:[#allocation2] sm:$0xff] }
 0x886   :  { %v1597_v13 = vld [vmem:[#allocation2 + $0x8] sm:$0xff]  ;;  %1825 = vst [vmem:[#allocation2] sm:$0xf0] %v1823_v14  ;;  %1830 = vst [vmem:[#allocation2] sm:$0xf] %v3356_v50 }
 0x887   :  { %1634 = vmatprep.subr.mxu0 %v1597_v13  ;;  %1826 = vst [vmem:[#allocation2 + $0x8] sm:$0xf0] %v2657_v46  ;;  %1831 = vst [vmem:[#allocation2 + $0x8] sm:$0xf] %v1828_v22  ;;  %v1731_v14 = vld [vmem:[%s3488_s29] sm:$0xf] }
 0x888   :  { %1635 = vmatpush1.msra.mxu0 %v1596_v9 }
 0x889   :  { %2650 = vmatmul.mubr.msk.f32.vlgmr.msra.gmra.mrb[30].mxu0 %vm189_vm0, %v3152_v23 }
 0x88a   :  { %1704 = vmatprep.mubr.f32.mxu0 %v2881_v4 }
 0x88d   :  { %2651 = vmatmul.mubr.msk.f32.gmra.mrb[32].mxu0 %vm189_vm0, %v3158_v24  ;;  %v1836_v22 = vld [vmem:[#allocation2] sm:$0xff] }
 0x88e   :  { %1710 = vmatprep.mubr.f32.mxu0 %v2881_v4  ;;  %v1837_v46 = vld [vmem:[#allocation2 + $0x8] sm:$0xff] }
 0x891   :  { %2652 = vmatmul.mubr.msk.f32.gmra.mrb[34].mxu0 %vm189_vm0, %v3164_v26 }
 0x892   :  { %1716 = vmatprep.mubr.f32.mxu0 %v2881_v4 }
 0x895   :  { %2653 = vmatmul.mubr.msk.f32.gmra.mrb[36].mxu0 %vm189_vm0, %v3170_v34 }
 0x896   :  { %2045 = vmatprep.mubr.f32.mxu0 %v2881_v4 }
 0x95c   :  { %v1700_v20 = vpop.f32.mrb[30].mxu0 }
 0x95d   :  { %v1702_v23 = vpop.f32.mrb[31].mxu0  ;;  %v1701_v25 = vadd.f32 %v1700_v20, %v1605_v17 }
 0x95e   :  { %v1703_v28 = vadd.f32 %v1702_v23, %v1605_v17 }
 0x95f   :  { %v1723_v2 = vmax.f32 %v1701_v25, 0.0 }
 0x960   :  { %v1706_v29 = vpop.f32.mrb[32].mxu0  ;;  %v1724_v26 = vmax.f32 %v1703_v28, 0.0 }
 0x961   :  { %v1707_v24 = vadd.f32 %v1706_v29, %v1610_v27  ;;  %v1708_v30 = vpop.f32.mrb[33].mxu0 }
 0x962   :  { %v1709_v51 = vadd.f32 %v1708_v30, %v1610_v27  ;;  %v1850_v27 = vpop.permute.xlu1 %1849 }
 0x963   :  { %v1725_v6 = vmax.f32 %v1707_v24, 0.0 }
 0x964   :  { %v1726_v7 = vmax.f32 %v1709_v51, 0.0  ;;  %v1712_v31 = vpop.f32.mrb[34].mxu0 }
 0x965   :  { %v2729_v8 = vpack.c.bf16 %v1725_v6, %v1723_v2  ;;  %v1714_v37 = vpop.f32.mrb[35].mxu0  ;;  %v1713_v36 = vadd.f32 %v1712_v31, %v3269_v33 }
 0x966   :  { %v2727_v34 = vpack.c.bf16 %v1726_v7, %v1724_v26  ;;  %v1715_v39 = vadd.f32 %v1714_v37, %v3269_v33  ;;  %v1736_v33 = vpop.permute.xlu0 %1735 }
 0x967   :  { %v1727_v43 = vmax.f32 %v1713_v36, 0.0 }
 0x968   :  { %v1718_v12 = vpop.f32.mrb[36].mxu0  ;;  %2728 = vmatprep.subr.bf16.mxu1 %v2727_v34  ;;  %v1728_v16 = vmax.f32 %v1715_v39, 0.0  ;;  %v1860_v34 = vpop.permute.xlu1 %1859 }
 0x969   :  { %v1719_v40 = vadd.f32 %v1718_v12, %v1620_v38  ;;  %v1720_v41 = vpop.f32.mrb[37].mxu0  ;;  %2730 = vmatpush1.bf16.msra.mxu1 %v2729_v8 }
 0x96a   :  { %v1721_v42 = vadd.f32 %v1720_v41, %v1620_v38 }
 0x96b   :  { %v1729_v44 = vmax.f32 %v1719_v40, 0.0 }
 0x96c   :  { %v1730_v21 = vmax.f32 %v1721_v42, 0.0 }
 0x96d   :  { %v2733_v35 = vpack.c.bf16 %v1729_v44, %v1727_v43 }
 0x96e   :  { %v2731_v19 = vpack.c.bf16 %v1730_v21, %v1728_v16  ;;  %v1971_v21 = vld [vmem:[%s3490_s14] sm:$0xf] }
 0x970   :  { %2732 = vmatprep.subr.bf16.mxu1 %v2731_v19 }
 0x971   :  { %2734 = vmatpush1.bf16.msra.mxu1 %v2733_v35 }
 0x972   :  { %1874 = vmatprep.subr.mxu1 %v1837_v46 }
 0x974   :  { %2654 = vmatmul.mubr.msk.f32.vlgmr.msra.gmra.mrb[30].mxu1 %vm306_vm1, %v1731_v14 }
 0x975   :  { %1875 = vmatpush1.msra.mxu1 %v1836_v22  ;;  %1938 = vmatprep.mubr.f32.mxu1 %v2881_v4 }
 0x978   :  { %2658 = vmatmul.mubr.msk.f32.vlgmr.msra.gmra.mrb[32].mxu1 %vm189_vm0, %v3180_v10 }
 0x979   :  { %1944 = vmatprep.mubr.f32.mxu1 %v2881_v4 }
 0x97c   :  { %2659 = vmatmul.mubr.msk.f32.gmra.mrb[34].mxu1 %vm189_vm0, %v3186_v11 }
 0x97d   :  { %1950 = vmatprep.mubr.f32.mxu1 %v2881_v4 }
 0x980   :  { %2660 = vmatmul.mubr.msk.f32.gmra.mrb[36].mxu1 %vm189_vm0, %v3192_v15 }
 0x981   :  { %1956 = vmatprep.mubr.f32.mxu1 %v2881_v4 }
 0x984   :  { %2661 = vmatmul.mubr.msk.f32.gmra.mrb[38].mxu1 %vm189_vm0, %v3198_v18 }
 0x985   :  { %2273 = vmatprep.mubr.f32.mxu1 %v2881_v4 }
 0xa47   :  { %v1807_v10 = vpop.f32.mrb[30].mxu1 }
 0xa48   :  { %v1808_v9 = vadd.f32 %v1807_v10, %v1736_v33  ;;  %v1809_v13 = vpop.f32.mrb[31].mxu1 }
 0xa49   :  { %v1810_v17 = vadd.f32 %v1809_v13, %v1736_v33 }
 0xa4b   :  { %v1814_v20 = vcombine.low %v1808_v9, %v1810_v17  ;;  %v1940_v23 = vpop.f32.mrb[32].mxu1 }
 0xa4c   :  { %v1942_v11 = vpop.f32.mrb[33].mxu1  ;;  %v1941_v25 = vadd.f32 %v1940_v23, %v3271_v53 }
 0xa4d   :  { %2655 = vst [vmem:[%s3495_s4 + $0x8] sm:$0xff] %v1814_v20  ;;  %v1943_v15 = vadd.f32 %v1942_v11, %v3271_v53 }
 0xa4e   :  { %v1963_v30 = vmax.f32 %v1941_v25, 0.0 }
 0xa4f   :  { %v1946_v28 = vpop.f32.mrb[34].mxu1  ;;  %v1964_v2 = vmax.f32 %v1943_v15, 0.0 }
 0xa50   :  { %v1947_v29 = vadd.f32 %v1946_v28, %v1850_v27  ;;  %v1948_v24 = vpop.f32.mrb[35].mxu1 }
 0xa51   :  { %v1949_v18 = vadd.f32 %v1948_v24, %v1850_v27 }
 0xa52   :  { %v1965_v51 = vmax.f32 %v1947_v29, 0.0 }
 0xa53   :  { %v1966_v6 = vmax.f32 %v1949_v18, 0.0  ;;  %v1952_v26 = vpop.f32.mrb[36].mxu1  ;;  %v2308_v18 = vstv %s2670_s9 }
 0xa54   :  { %v2737_v7 = vpack.c.bf16 %v1965_v51, %v1963_v30  ;;  %v1954_v31 = vpop.f32.mrb[37].mxu1  ;;  %v1953_v37 = vadd.f32 %v1952_v26, %v3273_v54  ;;  %2814 = vrsqrt.f32 %v2308_v18  ;;  %vm2313_vm5 = vcmp.eq.f32.partialorder %v2308_v18, inf }
 0xa55   :  { %v2735_v8 = vpack.c.bf16 %v1966_v6, %v1964_v2  ;;  %v1955_v36 = vadd.f32 %v1954_v31, %v3273_v54  ;;  %v2310_v6 = vstv %s2671_s8  ;;  %vm2315_vm6 = vcmp.eq.f32.partialorder %v2308_v18, 0.0 }
 0xa56   :  { %v1967_v40 = vmax.f32 %v1953_v37, 0.0 }
 0xa57   :  { %v1958_v38 = vpop.f32.mrb[38].mxu1  ;;  %2736 = vmatprep.subr.bf16.mxu0 %v2735_v8  ;;  %v1968_v42 = vmax.f32 %v1955_v36, 0.0 }
 0xa58   :  { %v1959_v53 = vadd.f32 %v1958_v38, %v1860_v34  ;;  %v1960_v39 = vpop.f32.mrb[39].mxu1  ;;  %2738 = vmatpush1.bf16.msra.mxu0 %v2737_v7 }
 0xa59   :  { %v1961_v12 = vadd.f32 %v1960_v39, %v1860_v34 }
 0xa5a   :  { %v1969_v41 = vmax.f32 %v1959_v53, 0.0 }
 0xa5b   :  { %v1970_v43 = vmax.f32 %v1961_v12, 0.0 }
 0xa5c   :  { %v2741_v44 = vpack.c.bf16 %v1969_v41, %v1967_v40 }
 0xa5d   :  { %v2739_v16 = vpack.c.bf16 %v1970_v43, %v1968_v42 }
 0xa5e   :  { %v2815_v2 = vpop.eup %2814 }
 0xa5f   :  { %2740 = vmatprep.subr.bf16.mxu0 %v2739_v16 }
 0xa60   :  { %2742 = vmatpush1.bf16.msra.mxu0 %v2741_v44 }
 0xa63   :  { %2662 = vmatmul.mubr.msk.f32.vlgmr.msra.gmra.mrb[38].mxu0 %vm306_vm1, %v1971_v21 }
 0xa64   :  { %2166 = vmatprep.mubr.f32.mxu0 %v2881_v4 }
 0xb36   :  { %v2047_v54 = vpop.f32.mrb[38].mxu0 }
 0xb37   :  { %v2048_v35 = vadd.f32 %v2047_v54, %v3275_v55  ;;  %v2049_v19 = vpop.f32.mrb[39].mxu0 }
 0xb38   :  { %v2050_v46 = vadd.f32 %v2049_v19, %v3275_v55  ;;  %v992_v55 = vld [vmem:[%s3494_s2] sm:$0xf] }
 0xb39   :  { %2058 = vst [vmem:[#allocation2] sm:$0xf] %v2048_v35  ;;  %v2286_v14 = vmul.f32 %v2048_v35, %v2048_v35 }
 0xb3a   :  { %v2054_v22 = vcombine.low %v2048_v35, %v2050_v46  ;;  %2059 = vst [vmem:[#allocation2 + $0x8] sm:$0xf] %v2050_v46  ;;  %v2287_v33 = vmul.f32 %v2050_v46, %v2050_v46 }
 0xb3b   :  { %v2288_v10 = vsel %vm1079_vm2, %v2286_v14, 0.0 }
 0xb3c   :  { %2663 = vst [vmem:[%s3031_s27 + $0x8] sm:$0xff] %v2054_v22  ;;  %v2289_v9 = vsel %vm1079_vm2, %v2287_v33, 0.0 }
 0xb3d   :  { %v2290_v13 = vadd.f32 %v2289_v9, %v2288_v10 }
 0xb3f   :  { %2291 = vadd.xlane.f32.xlu1 %v2290_v13 }
 0xb40   :  { %v2064_v20 = vld [vmem:[#allocation2] sm:$0xff] }
 0xb41   :  { %v2065_v17 = vld [vmem:[#allocation2 + $0x8] sm:$0xff] }
 0xb42   :  { %2102 = vmatprep.subr.mxu0 %v2065_v17 }
 0xb43   :  { %2103 = vmatpush1.msra.mxu0 %v2064_v20 }
 0xb44   :  { %2664 = vmatmul.mubr.msk.f32.vlgmr.msra.gmra.mrb[40].mxu0 %vm189_vm0, %v3226_v45 }
 0xb45   :  { %2172 = vmatprep.mubr.f32.mxu0 %v2881_v4 }
 0xb48   :  { %2665 = vmatmul.mubr.msk.f32.gmra.mrb[42].mxu0 %vm189_vm0, %v3232_v47 }
 0xb49   :  { %2178 = vmatprep.mubr.f32.mxu0 %v2881_v4 }
 0xb4c   :  { %2666 = vmatmul.mubr.msk.f32.gmra.mrb[44].mxu0 %vm189_vm0, %v3238_v48 }
 0xb4d   :  { %2184 = vmatprep.mubr.f32.mxu0 %v2881_v4 }
 0xb50   :  { %995 = vperm.xlu1 %2799, %v992_v55   ;;  %2667 = vmatmul.mubr.msk.f32.gmra.mrb[46].mxu0 %vm189_vm0, %v3244_v49 }
 0xb51   :  { %2547 = vmatprep.mubr.f32.mxu0 %v2881_v4 }
 0xbcc   :  { %v2292_v45 = vpop.xlane.xlu1 %2291 }
 0xbcd   :  { %v2293_v23 = vrot.slane %v2292_v45, 4 }
 0xbcf   :  { %v2294_v11 = vadd.f32 %v2293_v23, %v2292_v45 }
 0xbd0   :  { %v996_v25 = vpop.permute.xlu1 %995 }
 0xbd1   :  { %v2295_v47 = vrot.slane %v2294_v11, 2  ;;  %v1068_v27 = vadd.f32 %v3329_v3, %v996_v25  ;;  %v1070_v15 = vadd.f32 %v3331_v5, %v996_v25  ;;  %v2312_v3 = vmul.f32 %v2815_v2, %v2308_v18 }
 0xbd2   :  { %v2316_v5 = vand.u32 2147483648, %v2308_v18 }
 0xbd3   :  { %v1074_v28 = vcombine.low %v1068_v27, %v1070_v15  ;;  %v2296_v48 = vadd.f32 %v2295_v47, %v2294_v11  ;;  %v2314_v26 = vsel %vm2313_vm5, %v2308_v18, %v2312_v3 }
 0xbd4   :  { %v2317_v37 = vsel %vm2315_vm6, %v2316_v5, %v2314_v26 }
 0xbd5   :  { %1076 = vst [vmem:[%s3036_s30] sm:$0xff] %v1074_v28  ;;  %v2297_v29 = vrot.slane %v2296_v48, 1 }
 0xbd7   :  { %v2298_v24 = vadd.f32 %v2297_v29, %v2296_v48 }
 0xbd9   :  { %2761 = vpush %v2298_v24 }
 0xc0a   :  { %s2762_s13 = spop %2761 }
 0xc0b   :  { %v2300_v49 = vstv %s2762_s13 }
 0xc0c   :  { %v2301_v30 = vmul.f32 0.0009765625, %v2300_v49 }
 0xc0e   :  { %v2302_v51 = vadd.f32 1e-12, %v2301_v30 }
 0xc10   :  { %2816 = vrsqrt.f32 %v2302_v51 }
 0xc11   :  { %2818 = vrsqrt.f32 %v2310_v6 }
 0xc17   :  { %v2168_v7 = vpop.f32.mrb[40].mxu0 }
 0xc18   :  { %v2170_v31 = vpop.f32.mrb[41].mxu0  ;;  %v2169_v34 = vadd.f32 %v2168_v7, %v3277_v56 }
 0xc19   :  { %v2171_v53 = vadd.f32 %v2170_v31, %v3277_v56 }
 0xc1a   :  { %v2817_v8 = vpop.eup %2816  ;;  %v2191_v44 = vmax.f32 %v2169_v34, 0.0 }
 0xc1b   :  { %v2304_v36 = vmul.f32 %v2817_v8, %v2048_v35  ;;  %v2305_v38 = vmul.f32 %v2817_v8, %v2050_v46  ;;  %v2174_v39 = vpop.f32.mrb[42].mxu0  ;;  %v2192_v54 = vmax.f32 %v2171_v53, 0.0  ;;  %v2819_v22 = vpop.eup %2818 }
 0xc1c   :  { %v2175_v12 = vadd.f32 %v2174_v39, %v3279_v57  ;;  %v2176_v40 = vpop.f32.mrb[43].mxu0 }
 0xc1d   :  { %v2318_v41 = vmul.f32 %v2317_v37, %v2304_v36  ;;  %v2319_v42 = vmul.f32 %v2317_v37, %v2305_v38  ;;  %v2177_v43 = vadd.f32 %v2176_v40, %v3279_v57 }
 0xc1e   :  { %v2193_v16 = vmax.f32 %v2175_v12, 0.0 }
 0xc1f   :  { %v2322_v21 = vcombine.low %v2318_v41, %v2319_v42  ;;  %v2194_v19 = vmax.f32 %v2177_v43, 0.0  ;;  %v2180_v14 = vpop.f32.mrb[44].mxu0 }
 0xc20   :  { %v2745_v35 = vpack.c.bf16 %v2193_v16, %v2191_v44  ;;  %v2182_v46 = vpop.f32.mrb[45].mxu0  ;;  %v2181_v10 = vadd.f32 %v2180_v14, %v3281_v58  ;;  %v2473_v44 = vld [vmem:[%s3498_s5] sm:$0xf] }
 0xc21   :  { %v2324_v56 = vsub.f32 %v3356_v50, %v2322_v21  ;;  %v2743_v33 = vpack.c.bf16 %v2194_v19, %v2192_v54  ;;  %v2183_v13 = vadd.f32 %v2182_v46, %v3281_v58  ;;  %v2199_v58 = vld [vmem:[%s3496_s15] sm:$0xf] }
 0xc22   :  { %v2195_v23 = vmax.f32 %v2181_v10, 0.0 }
 0xc23   :  { %v2326_v9 = vmul.f32 %v2819_v22, %v2324_v56  ;;  %v2186_v17 = vpop.f32.mrb[46].mxu0  ;;  %2744 = vmatprep.subr.bf16.mxu1 %v2743_v33  ;;  %v2196_v11 = vmax.f32 %v2183_v13, 0.0 }
 0xc24   :  { %v2187_v57 = vadd.f32 %v2186_v17, %v3283_v59  ;;  %v2188_v20 = vpop.f32.mrb[47].mxu0  ;;  %2746 = vmatpush1.bf16.msra.mxu1 %v2745_v35 }
 0xc25   :  { %2672 = vst [vmem:[%s3041_s6 + $0x8] sm:$0xff] %v2326_v9  ;;  %v2330_v55 = vcombine.high %v2326_v9, %v2326_v9  ;;  %2332 = vst [vmem:[#allocation2] sm:$0xf] %v2326_v9  ;;  %v2189_v45 = vadd.f32 %v2188_v20, %v3283_v59  ;;  %v2204_v59 = vpop.permute.xlu0 %2203 }
 0xc26   :  { %v2197_v50 = vmax.f32 %v2187_v57, 0.0 }
 0xc27   :  { %2333 = vst [vmem:[#allocation2 + $0x8] sm:$0xf] %v2330_v55  ;;  %v2198_v25 = vmax.f32 %v2189_v45, 0.0 }
 0xc28   :  { %v2749_v47 = vpack.c.bf16 %v2197_v50, %v2195_v23 }
 0xc29   :  { %v2747_v27 = vpack.c.bf16 %v2198_v25, %v2196_v11 }
 0xc2b   :  { %2748 = vmatprep.subr.bf16.mxu1 %v2747_v27 }
 0xc2c   :  { %2750 = vmatpush1.bf16.msra.mxu1 %v2749_v47  ;;  %v2338_v28 = vld [vmem:[#allocation2] sm:$0xff] }
 0xc2e   :  { %v2339_v15 = vld [vmem:[#allocation2 + $0x8] sm:$0xff] }
 0xc2f   :  { %2668 = vmatmul.mubr.msk.f32.vlgmr.msra.gmra.mrb[40].mxu1 %vm306_vm1, %v2199_v58  ;;  %2376 = vmatprep.subr.mxu1 %v2339_v15 }
 0xc30   :  { %2377 = vmatpush1.msra.mxu1 %v2338_v28  ;;  %2440 = vmatprep.mubr.f32.mxu1 %v2881_v4 }
 0xc33   :  { %2673 = vmatmul.mubr.msk.f32.vlgmr.msra.gmra.mrb[42].mxu1 %vm189_vm0, %v3306_v32 }
 0xc34   :  { %2446 = vmatprep.mubr.f32.mxu1 %v2881_v4 }
 0xc37   :  { %2674 = vmatmul.mubr.msk.f32.gmra.mrb[44].mxu1 %vm189_vm0, %v3312_v52 }
 0xc38   :  { %2452 = vmatprep.mubr.f32.mxu1 %v2881_v4 }
 0xc3b   :  { %2675 = vmatmul.mubr.msk.f32.gmra.mrb[46].mxu1 %vm189_vm0, %v3318_v1 }
 0xc3c   :  { %2458 = vmatprep.mubr.f32.mxu1 %v2881_v4 }
 0xc3f   :  { %2676 = vmatmul.mubr.msk.f32.gmra.mrb[48].mxu1 %vm189_vm0, %v3324_v63 }
 0xd02   :  { %v2275_v48 = vpop.f32.mrb[40].mxu1 }
 0xd03   :  { %v2276_v29 = vadd.f32 %v2275_v48, %v2204_v59  ;;  %v2277_v24 = vpop.f32.mrb[41].mxu1 }
 0xd04   :  { %v2278_v32 = vadd.f32 %v2277_v24, %v2204_v59 }
 0xd06   :  { %v2282_v18 = vcombine.low %v2276_v29, %v2278_v32  ;;  %v2442_v49 = vpop.f32.mrb[42].mxu1 }
 0xd07   :  { %v2444_v30 = vpop.f32.mrb[43].mxu1  ;;  %v2443_v52 = vadd.f32 %v2442_v49, %v3285_v60 }
 0xd08   :  { %2669 = vst [vmem:[%s3036_s30 + $0x8] sm:$0xff] %v2282_v18  ;;  %v2445_v51 = vadd.f32 %v2444_v30, %v3285_v60 }
 0xd09   :  { %v2465_v63 = vmax.f32 %v2443_v52, 0.0 }
 0xd0a   :  { %v2448_v2 = vpop.f32.mrb[44].mxu1  ;;  %v2466_v5 = vmax.f32 %v2445_v51, 0.0 }
 0xd0b   :  { %v2449_v1 = vadd.f32 %v2448_v2, %v3287_v61  ;;  %v2450_v4 = vpop.f32.mrb[45].mxu1 }
 0xd0c   :  { %v2451_v6 = vadd.f32 %v2450_v4, %v3287_v61 }
 0xd0d   :  { %v2467_v3 = vmax.f32 %v2449_v1, 0.0 }
 0xd0e   :  { %v2468_v26 = vmax.f32 %v2451_v6, 0.0  ;;  %v2454_v7 = vpop.f32.mrb[46].mxu1 }
 0xd0f   :  { %v2753_v31 = vpack.c.bf16 %v2467_v3, %v2465_v63  ;;  %v2456_v8 = vpop.f32.mrb[47].mxu1  ;;  %v2455_v34 = vadd.f32 %v2454_v7, %v3289_v62 }
 0xd10   :  { %v2751_v37 = vpack.c.bf16 %v2468_v26, %v2466_v5  ;;  %v2457_v36 = vadd.f32 %v2456_v8, %v3289_v62  ;;  %v2478_v62 = vpop.permute.xlu0 %2477 }
 0xd11   :  { %v2469_v39 = vmax.f32 %v2455_v34, 0.0 }
 0xd12   :  { %v2460_v60 = vpop.f32.mrb[48].mxu1  ;;  %2752 = vmatprep.subr.bf16.mxu0 %v2751_v37  ;;  %v2470_v40 = vmax.f32 %v2457_v36, 0.0 }
 0xd13   :  { %v2461_v38 = vadd.f32 %v2460_v60, %v3291_v0  ;;  %v2462_v53 = vpop.f32.mrb[49].mxu1  ;;  %2754 = vmatpush1.bf16.msra.mxu0 %v2753_v31 }
 0xd14   :  { %v2463_v61 = vadd.f32 %v2462_v53, %v3291_v0 }
 0xd15   :  { %v2471_v12 = vmax.f32 %v2461_v38, 0.0 }
 0xd16   :  { %v2472_v41 = vmax.f32 %v2463_v61, 0.0 }
 0xd17   :  { %v2757_v42 = vpack.c.bf16 %v2471_v12, %v2469_v39 }
 0xd18   :  { %v2755_v43 = vpack.c.bf16 %v2472_v41, %v2470_v40 }
 0xd1a   :  { %2756 = vmatprep.subr.bf16.mxu0 %v2755_v43 }
 0xd1b   :  { %2758 = vmatpush1.bf16.msra.mxu0 %v2757_v42 }
 0xd1e   :  { %2677 = vmatmul.mubr.msk.f32.vlgmr.msra.gmra.mrb[48].mxu0 %vm306_vm1, %v2473_v44 }
 0xdf1   :  { %v2549_v16 = vpop.f32.mrb[48].mxu0 }
 0xdf2   :  { %v2550_v21 = vadd.f32 %v2549_v16, %v2478_v62  ;;  %v2551_v54 = vpop.f32.mrb[49].mxu0 }
 0xdf3   :  { %v2552_v19 = vadd.f32 %v2551_v54, %v2478_v62 }
 0xdf5   :  { %v2556_v14 = vcombine.low %v2550_v21, %v2552_v19 }
 0xdf7   :  { %2678 = vst [vmem:[%s3046_s19 + $0x8] sm:$0xff] %v2556_v14 }
 0xdf8   :  { %2584 = vsyncpa [#allocation4], 1 }
 0xdf9   :  { %2585 = vsyncpa [#allocation6], 1 }

</bundles_post_ra>
